<compile_context>
chip_gen: v5e
topology: v5e:2x2
jax: 0.10.0
libtpu: 0.0.40
codegen_flags: <defaults>
</compile_context>

<pallas_src>
import math

import jax
import jax.numpy as jnp
from jax.experimental import pallas as pl
from jax.experimental.pallas import tpu as pltpu


# --------------------------------------------------------------------------- #
# Kernels
# --------------------------------------------------------------------------- #
def ffn_kernel_resident(x_ref, w1_ref, b1_ref, w2_ref, b2_ref, o_ref):
    """One batch tile; W1/W2/b1/b2 stay VMEM-resident for the whole grid."""
    x = x_ref[...].astype(jnp.bfloat16)                     # VPU cast, MXU-native
    h = jnp.dot(x, w1_ref[...], preferred_element_type=jnp.float32) + b1_ref[...]
    h = jnp.maximum(h, 0.0).astype(jnp.bfloat16)            # ReLU in f32, cast for MXU
    y = jnp.dot(h, w2_ref[...], preferred_element_type=jnp.float32) + b2_ref[...]
    # TODO(synk): training-mode dropout would use pltpu.prng_seed +
    # pltpu.prng_random_bits and scale by 1/0.8; eval mode == identity.
    o_ref[...] = y.astype(o_ref.dtype)


def ffn_kernel_streamed(x_ref, w1_ref, b1_ref, w2_ref, b2_ref, o_ref, acc_ref):
    """Hidden-dim (K) tiled path: W1 blocked over its output cols, W2 over its
    input rows; f32 accumulator in VMEM scratch (P3 init/finalize pattern)."""
    k = pl.program_id(1)

    @pl.when(k == 0)
    def _():
        acc_ref[...] = jnp.broadcast_to(b2_ref[...], acc_ref.shape)

    x = x_ref[...].astype(jnp.bfloat16)
    h = jnp.dot(x, w1_ref[...], preferred_element_type=jnp.float32) + b1_ref[...]
    h = jnp.maximum(h, 0.0).astype(jnp.bfloat16)
    acc_ref[...] += jnp.dot(h, w2_ref[...], preferred_element_type=jnp.float32)

    @pl.when(k == pl.num_programs(1) - 1)
    def _():
        o_ref[...] = acc_ref[...].astype(o_ref.dtype)


# --------------------------------------------------------------------------- #
# Host-side helpers
# --------------------------------------------------------------------------- #
def _round_up(x, m):
    return (x + m - 1) // m * m


def _vmem_capacity_bytes():
    """Physical VMEM per TensorCore; fall back to the v7x worst case (64 MiB)."""
    try:
        cap = int(pltpu.get_tpu_info().vmem_capacity_bytes)
        if cap > 0:
            return cap
    except Exception:
        pass
    return 64 << 20


def prepare_ffn_params(w1, b1, w2, b2, *, lane_multiple=256):
    """Pad + cast parameters ONCE (off the hot path).

    Weights are stored (in_features, out_features), zero-padded to a multiple of
    `lane_multiple` on both axes and cast to bf16 (halves weight HBM bytes, MXU
    native).  Biases stay f32 for the epilogue.  Zero padding is exact: padded
    W/b columns give h == 0, ReLU(0) == 0, padded rows/cols are sliced off.
    """
    s = w1.shape[0]
    s_pad = _round_up(s, lane_multiple)
    pad2 = ((0, s_pad - s), (0, s_pad - s))
    return {
        "w1": jnp.pad(w1, pad2).astype(jnp.bfloat16),
        "b1": jnp.pad(b1, (0, s_pad - s)).astype(jnp.float32).reshape(1, s_pad),
        "w2": jnp.pad(w2, pad2).astype(jnp.bfloat16),
        "b2": jnp.pad(b2, (0, s_pad - s)).astype(jnp.float32).reshape(1, s_pad),
        "state_size": s,
        "padded_size": s_pad,
    }


def _resident_call(xp, w1, b1, w2, b2, *, TM, n_tiles, B_pad, S_pad,
                   vmem_limit, cost, weight_pipeline_mode):
    kw = {} if weight_pipeline_mode is None else {"pipeline_mode": weight_pipeline_mode}
    return pl.pallas_call(
        ffn_kernel_resident,
        out_shape=jax.ShapeDtypeStruct((B_pad, S_pad), xp.dtype),
        grid_spec=pltpu.PrefetchScalarGridSpec(
            num_scalar_prefetch=0,
            grid=(n_tiles,),
            in_specs=[
                pl.BlockSpec((TM, S_pad), lambda i: (i, 0)),           # x streams
                pl.BlockSpec((S_pad, S_pad), lambda i: (0, 0), **kw),  # W1 resident
                pl.BlockSpec((1, S_pad), lambda i: (0, 0), **kw),      # b1 resident
                pl.BlockSpec((S_pad, S_pad), lambda i: (0, 0), **kw),  # W2 resident
                pl.BlockSpec((1, S_pad), lambda i: (0, 0), **kw),      # b2 resident
            ],
            out_specs=pl.BlockSpec((TM, S_pad), lambda i: (i, 0)),
        ),
        compiler_params=pltpu.CompilerParams(
            dimension_semantics=("parallel",),   # batch tiles across TCs
            vmem_limit_bytes=vmem_limit,
        ),
        cost_estimate=cost,
    )(xp, w1, b1, w2, b2)


def _streamed_call(xp, w1, b1, w2, b2, *, TM, TK, n_tiles, B_pad, S_pad,
                   vmem_limit, cost):
    return pl.pallas_call(
        ffn_kernel_streamed,
        out_shape=jax.ShapeDtypeStruct((B_pad, S_pad), xp.dtype),
        grid_spec=pltpu.PrefetchScalarGridSpec(
            num_scalar_prefetch=0,
            grid=(n_tiles, S_pad // TK),
            in_specs=[
                pl.BlockSpec((TM, S_pad), lambda i, k: (i, 0)),   # x tile
                pl.BlockSpec((S_pad, TK), lambda i, k: (0, k)),   # W1 hidden-col tile
                pl.BlockSpec((1, TK), lambda i, k: (0, k)),       # b1 tile
                pl.BlockSpec((TK, S_pad), lambda i, k: (k, 0)),   # W2 hidden-row tile
                pl.BlockSpec((1, S_pad), lambda i, k: (0, 0)),    # b2
            ],
            out_specs=pl.BlockSpec((TM, S_pad), lambda i, k: (i, 0)),
            scratch_shapes=[pltpu.VMEM((TM, S_pad), jnp.float32)],  # f32 accumulator
        ),
        compiler_params=pltpu.CompilerParams(
            dimension_semantics=("parallel", "arbitrary"),
            vmem_limit_bytes=vmem_limit,
        ),
        cost_estimate=cost,
    )(xp, w1, b1, w2, b2)


def ffn_forward(x, params, *, tm=256, force_stream=False, tk=None):
    """x: (B, state_size) f32; params: output of prepare_ffn_params."""
    B, S = x.shape
    assert S == params["state_size"], "x feature dim must match state_size"
    S_pad = params["padded_size"]

    # --- batch tiling: >= 2 grid steps when possible (megacore + pipelining) ---
    B_round8 = _round_up(B, 8)
    TM = min(_round_up(tm, 8), B_round8)
    n_tiles = pl.cdiv(B_round8, TM)
    if B_round8 >= 16:
        n_tiles = max(n_tiles, 2)
    TM = _round_up(pl.cdiv(B_round8, n_tiles), 8)
    B_pad = n_tiles * TM

    xp = jnp.pad(x, ((0, B_pad - B), (0, S_pad - S)))

    # --- generation-aware VMEM budget (never exceeds physical; leaves headroom) ---
    cap = int(0.75 * _vmem_capacity_bytes())          # ~48 MiB v7x, ~96 MiB v5e/v6e
    # Conservative resident estimate: double-buffered weights/biases/x/out plus the
    # compiler-materialized h and y tiles (TM*S_pad*4 each; they do NOT fit in vregs).
    resident_need = (
        2 * (2 * S_pad * S_pad * 2)       # W1 + W2 (bf16), worst-case 2 buffers each
        + 2 * (2 * 2 * S_pad * 4)         # b1 + b2 (f32), 2 buffers each
        + 2 * (2 * TM * S_pad * 4)        # x + out tiles (f32), 2 buffers each
        + 2 * (TM * S_pad * 4)            # h + y compiler scratch (f32)
    )
    use_streamed = force_stream or resident_need > cap

    flops = 4 * B_pad * S_pad * S_pad     # two matmuls, 2*M*N*K each

    if not use_streamed:
        vmem_limit = int(min(cap, max(resident_need + (8 << 20), 32 << 20)))
        cost = pl.CostEstimate(
            flops=flops,
            transcendentals=0,
            bytes_accessed=2 * B_pad * S_pad * 4 + 2 * S_pad * S_pad * 2
            + 2 * S_pad * 4,
        )
        args = dict(TM=TM, n_tiles=n_tiles, B_pad=B_pad, S_pad=S_pad,
                    vmem_limit=vmem_limit, cost=cost)
        try:
            out_padded = jax.block_until_ready(
                _resident_call(xp, params["w1"], params["b1"], params["w2"],
                               params["b2"], weight_pipeline_mode=pl.Buffered(1),
                               **args))
        except Exception:
            # pipeline_mode=Buffered(1) unsupported on this JAX/Mosaic version;
            # the VMEM estimate already assumed double-buffered weights, so the
            # default-spec variant is guaranteed to fit.
            out_padded = _resident_call(
                xp, params["w1"], params["b1"], params["w2"], params["b2"],
                weight_pipeline_mode=None, **args)
    else:
        TK = tk if tk is not None else (512 if S_pad % 512 == 0 else 256)
        assert TK % 128 == 0 and S_pad % TK == 0, "hidden tile must divide S_pad"
        streamed_need = (
            2 * (2 * S_pad * TK * 2)          # W1 + W2 blocks (bf16), double-buffered
            + 2 * (2 * TM * S_pad * 4)        # x + out tiles
            + TM * S_pad * 4                  # f32 accumulator scratch
            + TM * S_pad * 4                  # h scratch
            + 2 * (2 * S_pad * 4)             # biases
        )
        vmem_limit = int(min(cap, max(streamed_need + (8 << 20), 32 << 20)))
        cost = pl.CostEstimate(
            flops=flops,
            transcendentals=0,
            bytes_accessed=2 * B_pad * S_pad * 4
            + n_tiles * (2 * S_pad * S_pad * 2 + 2 * S_pad * 4),
        )
        out_padded = _streamed_call(
            xp, params["w1"], params["b1"], params["w2"], params["b2"],
            TM=TM, TK=TK, n_tiles=n_tiles, B_pad=B_pad, S_pad=S_pad,
            vmem_limit=vmem_limit, cost=cost)

    return out_padded[:B, :S]


# --------------------------------------------------------------------------- #
# Reference / init
# --------------------------------------------------------------------------- #
def init_linear_params(key, in_features, out_features):
    """torch.nn.Linear default init: U(-1/sqrt(fan_in), 1/sqrt(fan_in)).
    Weight stored as (in, out) == transposed torch weight."""
    k_w, k_b = jax.random.split(key)
    bound = 1.0 / math.sqrt(in_features)
    w = jax.random.uniform(k_w, (in_features, out_features), jnp.float32,
                           minval=-bound, maxval=bound)
    b = jax.random.uniform(k_b, (out_features,), jnp.float32,
                           minval=-bound, maxval=bound)
    return w, b


def ffn_reference_f32(x, w1, b1, w2, b2):
    return jnp.maximum(x @ w1 + b1, 0.0) @ w2 + b2


def ffn_reference_bf16(x, w1, b1, w2, b2):
    """Matches the kernel's numerics: bf16 matmul inputs, f32 accumulation."""
    h = jnp.dot(x.astype(jnp.bfloat16), w1.astype(jnp.bfloat16),
                preferred_element_type=jnp.float32) + b1
    h = jnp.maximum(h, 0.0)
    return jnp.dot(h.astype(jnp.bfloat16), w2.astype(jnp.bfloat16),
                   preferred_element_type=jnp.float32) + b2


if __name__ == "__main__":
    state_size = 200   # FFN default state_size (padded to 256 lanes internally)
    batch = 16

    key = jax.random.PRNGKey(0)
    k_x, k_l1, k_l2 = jax.random.split(key, 3)

    x = jax.random.normal(k_x, (batch, state_size), jnp.float32)
    w1, b1 = init_linear_params(k_l1, state_size, state_size)
    w2, b2 = init_linear_params(k_l2, state_size, state_size)

    # Pad + cast weights once, off the hot path.
    params = prepare_ffn_params(w1, b1, w2, b2)

    # Default (resident-weight) path.
    out = jax.block_until_ready(ffn_forward(x, params))
    # Also exercise the K-tiled streaming path (used automatically for large
    # state_size on v7x); force it here with a small hidden tile.
    out_stream = jax.block_until_ready(ffn_forward(x, params, force_stream=True,
                                                   tk=128))

    ref_bf16 = ffn_reference_bf16(x, w1, b1, w2, b2)
    ref_f32 = ffn_reference_f32(x, w1, b1, w2, b2)

    assert out.shape == (batch, state_size)
    assert jnp.allclose(out, ref_bf16, atol=1e-3, rtol=1e-3), \
        "resident path mismatch vs bf16 reference"
    assert jnp.allclose(out_stream, ref_bf16, atol=1e-3, rtol=1e-3), \
        "streamed path mismatch vs bf16 reference"
    assert jnp.allclose(out, ref_f32, atol=1e-1, rtol=1e-1), \
        "sanity mismatch vs f32 reference"

    print("KERNEL_OK")
</pallas_src>

<mosaic_0001>
module attributes {stable_mosaic.version = 11 : i64} {
  func.func @ffn_kernel_resident(%arg0: i32, %arg1: memref<8x256xf32, #tpu.memory_space<vmem>>, %arg2: memref<256x256xbf16, #tpu.memory_space<vmem>>, %arg3: memref<1x256xf32, #tpu.memory_space<vmem>>, %arg4: memref<256x256xbf16, #tpu.memory_space<vmem>>, %arg5: memref<1x256xf32, #tpu.memory_space<vmem>>, %arg6: memref<8x256xf32, #tpu.memory_space<vmem>>) attributes {dimension_semantics = [#tpu.dimension_semantics<parallel>], iteration_bounds = array<i64: 2>, scalar_prefetch = 0 : i64, scratch_operands = 0 : i64, tpu.core_type = #tpu.core_type<tc>, window_params = [{transform_indices = @transform_0, window_bounds = array<i64: 8, 256>}, {pipeline_mode = #tpu.pipeline_mode<synchronous>, transform_indices = @transform_1, window_bounds = array<i64: 256, 256>}, {pipeline_mode = #tpu.pipeline_mode<synchronous>, transform_indices = @transform_2, window_bounds = array<i64: 1, 256>}, {pipeline_mode = #tpu.pipeline_mode<synchronous>, transform_indices = @transform_3, window_bounds = array<i64: 256, 256>}, {pipeline_mode = #tpu.pipeline_mode<synchronous>, transform_indices = @transform_4, window_bounds = array<i64: 1, 256>}, {transform_indices = @transform_5, window_bounds = array<i64: 8, 256>}]} {
    %c0 = arith.constant 0 : index
    %c0_0 = arith.constant 0 : index
    %0 = vector.load %arg1[%c0, %c0_0] : memref<8x256xf32, #tpu.memory_space<vmem>>, vector<8x256xf32>
    %1 = arith.truncf %0 : vector<8x256xf32> to vector<8x256xbf16>
    %c0_1 = arith.constant 0 : index
    %c0_2 = arith.constant 0 : index
    %2 = vector.load %arg2[%c0_1, %c0_2] : memref<256x256xbf16, #tpu.memory_space<vmem>>, vector<256x256xbf16>
    %cst = arith.constant dense<0.000000e+00> : vector<8x256xf32>
    %3 = tpu.matmul %1, %2, %cst {dimension_numbers = #tpu.dot_dimension_numbers<[1], [0], [0], [1], [0, 0, 1, 1], [], []>} : vector<8x256xbf16>, vector<256x256xbf16>, vector<8x256xf32> -> vector<8x256xf32>
    %c0_3 = arith.constant 0 : index
    %c0_4 = arith.constant 0 : index
    %4 = vector.load %arg3[%c0_3, %c0_4] : memref<1x256xf32, #tpu.memory_space<vmem>>, vector<1x256xf32>
    %5 = vector.broadcast %4 : vector<1x256xf32> to vector<8x256xf32>
    %6 = arith.addf %3, %5 : vector<8x256xf32>
    %cst_5 = arith.constant 0.000000e+00 : f32
    %7 = vector.broadcast %cst_5 : f32 to vector<8x256xf32>
    %8 = arith.maximumf %6, %7 : vector<8x256xf32>
    %9 = arith.truncf %8 : vector<8x256xf32> to vector<8x256xbf16>
    %c0_6 = arith.constant 0 : index
    %c0_7 = arith.constant 0 : index
    %10 = vector.load %arg4[%c0_6, %c0_7] : memref<256x256xbf16, #tpu.memory_space<vmem>>, vector<256x256xbf16>
    %cst_8 = arith.constant dense<0.000000e+00> : vector<8x256xf32>
    %11 = tpu.matmul %9, %10, %cst_8 {dimension_numbers = #tpu.dot_dimension_numbers<[1], [0], [0], [1], [0, 0, 1, 1], [], []>} : vector<8x256xbf16>, vector<256x256xbf16>, vector<8x256xf32> -> vector<8x256xf32>
    %c0_9 = arith.constant 0 : index
    %c0_10 = arith.constant 0 : index
    %12 = vector.load %arg5[%c0_9, %c0_10] : memref<1x256xf32, #tpu.memory_space<vmem>>, vector<1x256xf32>
    %13 = vector.broadcast %12 : vector<1x256xf32> to vector<8x256xf32>
    %14 = arith.addf %11, %13 : vector<8x256xf32>
    %c0_11 = arith.constant 0 : index
    %c0_12 = arith.constant 0 : index
    %15 = vector.load %arg6[%c0_11, %c0_12] : memref<8x256xf32, #tpu.memory_space<vmem>>, vector<8x256xf32>
    tpu.vector_store %arg6[%c0_11, %c0_12], %14 {strides = array<i32>} : memref<8x256xf32, #tpu.memory_space<vmem>>, vector<8x256xf32>,
    return
  }
  func.func @transform_0(%arg0: i32) -> (i32, i32) {
    %c0_i32 = arith.constant 0 : i32
    %c0_i32_0 = arith.constant 0 : i32
    return %arg0, %c0_i32 : i32, i32
  }
  func.func @transform_1(%arg0: i32) -> (i32, i32) {
    %c0_i32 = arith.constant 0 : i32
    %c0_i32_0 = arith.constant 0 : i32
    %c0_i32_1 = arith.constant 0 : i32
    return %c0_i32, %c0_i32_0 : i32, i32
  }
  func.func @transform_2(%arg0: i32) -> (i32, i32) {
    %c0_i32 = arith.constant 0 : i32
    %c0_i32_0 = arith.constant 0 : i32
    %c0_i32_1 = arith.constant 0 : i32
    return %c0_i32, %c0_i32_0 : i32, i32
  }
  func.func @transform_3(%arg0: i32) -> (i32, i32) {
    %c0_i32 = arith.constant 0 : i32
    %c0_i32_0 = arith.constant 0 : i32
    %c0_i32_1 = arith.constant 0 : i32
    return %c0_i32, %c0_i32_0 : i32, i32
  }
  func.func @transform_4(%arg0: i32) -> (i32, i32) {
    %c0_i32 = arith.constant 0 : i32
    %c0_i32_0 = arith.constant 0 : i32
    %c0_i32_1 = arith.constant 0 : i32
    return %c0_i32, %c0_i32_0 : i32, i32
  }
  func.func @transform_5(%arg0: i32) -> (i32, i32) {
    %c0_i32 = arith.constant 0 : i32
    %c0_i32_0 = arith.constant 0 : i32
    return %arg0, %c0_i32 : i32, i32
  }
}

module attributes {stable_mosaic.version = 11 : i64} {
  func.func @ffn_kernel_resident(%arg0: i32, %arg1: memref<8x256xf32, #tpu.memory_space<vmem>>, %arg2: memref<256x256xbf16, #tpu.memory_space<vmem>>, %arg3: memref<1x256xf32, #tpu.memory_space<vmem>>, %arg4: memref<256x256xbf16, #tpu.memory_space<vmem>>, %arg5: memref<1x256xf32, #tpu.memory_space<vmem>>, %arg6: memref<8x256xf32, #tpu.memory_space<vmem>>) attributes {dimension_semantics = [#tpu.dimension_semantics<parallel>], iteration_bounds = array<i64: 2>, scalar_prefetch = 0 : i64, scratch_operands = 0 : i64, tpu.core_type = #tpu.core_type<tc>, window_params = [{transform_indices = @transform_0, window_bounds = array<i64: 8, 256>}, {pipeline_mode = #tpu.pipeline_mode<synchronous>, transform_indices = @transform_1, window_bounds = array<i64: 256, 256>}, {pipeline_mode = #tpu.pipeline_mode<synchronous>, transform_indices = @transform_2, window_bounds = array<i64: 1, 256>}, {pipeline_mode = #tpu.pipeline_mode<synchronous>, transform_indices = @transform_3, window_bounds = array<i64: 256, 256>}, {pipeline_mode = #tpu.pipeline_mode<synchronous>, transform_indices = @transform_4, window_bounds = array<i64: 1, 256>}, {transform_indices = @transform_5, window_bounds = array<i64: 8, 256>}]} {
    %c0 = arith.constant 0 : index
    %c0_0 = arith.constant 0 : index
    %0 = vector.load %arg1[%c0, %c0_0] : memref<8x256xf32, #tpu.memory_space<vmem>>, vector<8x256xf32>
    %1 = arith.truncf %0 : vector<8x256xf32> to vector<8x256xbf16>
    %c0_1 = arith.constant 0 : index
    %c0_2 = arith.constant 0 : index
    %2 = vector.load %arg2[%c0_1, %c0_2] : memref<256x256xbf16, #tpu.memory_space<vmem>>, vector<256x256xbf16>
    %cst = arith.constant dense<0.000000e+00> : vector<8x256xf32>
    %3 = tpu.matmul %1, %2, %cst {dimension_numbers = #tpu.dot_dimension_numbers<[1], [0], [0], [1], [0, 0, 1, 1], [], []>} : vector<8x256xbf16>, vector<256x256xbf16>, vector<8x256xf32> -> vector<8x256xf32>
    %c0_3 = arith.constant 0 : index
    %c0_4 = arith.constant 0 : index
    %4 = vector.load %arg3[%c0_3, %c0_4] : memref<1x256xf32, #tpu.memory_space<vmem>>, vector<1x256xf32>
    %5 = vector.broadcast %4 : vector<1x256xf32> to vector<8x256xf32>
    %6 = arith.addf %3, %5 : vector<8x256xf32>
    %cst_5 = arith.constant 0.000000e+00 : f32
    %7 = vector.broadcast %cst_5 : f32 to vector<8x256xf32>
    %8 = arith.maximumf %6, %7 : vector<8x256xf32>
    %9 = arith.truncf %8 : vector<8x256xf32> to vector<8x256xbf16>
    %c0_6 = arith.constant 0 : index
    %c0_7 = arith.constant 0 : index
    %10 = vector.load %arg4[%c0_6, %c0_7] : memref<256x256xbf16, #tpu.memory_space<vmem>>, vector<256x256xbf16>
    %cst_8 = arith.constant dense<0.000000e+00> : vector<8x256xf32>
    %11 = tpu.matmul %9, %10, %cst_8 {dimension_numbers = #tpu.dot_dimension_numbers<[1], [0], [0], [1], [0, 0, 1, 1], [], []>} : vector<8x256xbf16>, vector<256x256xbf16>, vector<8x256xf32> -> vector<8x256xf32>
    %c0_9 = arith.constant 0 : index
    %c0_10 = arith.constant 0 : index
    %12 = vector.load %arg5[%c0_9, %c0_10] : memref<1x256xf32, #tpu.memory_space<vmem>>, vector<1x256xf32>
    %13 = vector.broadcast %12 : vector<1x256xf32> to vector<8x256xf32>
    %14 = arith.addf %11, %13 : vector<8x256xf32>
    %c0_11 = arith.constant 0 : index
    %c0_12 = arith.constant 0 : index
    %15 = vector.load %arg6[%c0_11, %c0_12] : memref<8x256xf32, #tpu.memory_space<vmem>>, vector<8x256xf32>
    tpu.vector_store %arg6[%c0_11, %c0_12], %14 {strides = array<i32>} : memref<8x256xf32, #tpu.memory_space<vmem>>, vector<8x256xf32>,
    return
  }
  func.func @transform_0(%arg0: i32) -> (i32, i32) {
    %c0_i32 = arith.constant 0 : i32
    %c0_i32_0 = arith.constant 0 : i32
    return %arg0, %c0_i32 : i32, i32
  }
  func.func @transform_1(%arg0: i32) -> (i32, i32) {
    %c0_i32 = arith.constant 0 : i32
    %c0_i32_0 = arith.constant 0 : i32
    %c0_i32_1 = arith.constant 0 : i32
    return %c0_i32, %c0_i32_0 : i32, i32
  }
  func.func @transform_2(%arg0: i32) -> (i32, i32) {
    %c0_i32 = arith.constant 0 : i32
    %c0_i32_0 = arith.constant 0 : i32
    %c0_i32_1 = arith.constant 0 : i32
    return %c0_i32, %c0_i32_0 : i32, i32
  }
  func.func @transform_3(%arg0: i32) -> (i32, i32) {
    %c0_i32 = arith.constant 0 : i32
    %c0_i32_0 = arith.constant 0 : i32
    %c0_i32_1 = arith.constant 0 : i32
    return %c0_i32, %c0_i32_0 : i32, i32
  }
  func.func @transform_4(%arg0: i32) -> (i32, i32) {
    %c0_i32 = arith.constant 0 : i32
    %c0_i32_0 = arith.constant 0 : i32
    %c0_i32_1 = arith.constant 0 : i32
    return %c0_i32, %c0_i32_0 : i32, i32
  }
  func.func @transform_5(%arg0: i32) -> (i32, i32) {
    %c0_i32 = arith.constant 0 : i32
    %c0_i32_0 = arith.constant 0 : i32
    return %arg0, %c0_i32 : i32, i32
  }
}

</mosaic_0001>

<bundles_post_ra>
// kernel: tpu_custom_call.1
= control target key start
LH: loop header
LB: loop body
LE: loop exit
PB: predicated region body
PF: predicated region fallthrough
CT: control target
= control target key end

     0   :  { %10 = vsyncpa [#allocation3], 0  ;;  %s1736_s0 = inlined_call_operand.hbm [shape: f32[16,256], index: 0, kind: input, shape index: {}]   ;;  %s1737_s1 = inlined_call_operand.hbm [shape: bf16[256,256], index: 1, kind: input, shape index: {}]   ;;  %s1738_s2 = inlined_call_operand.hbm [shape: f32[1,256], index: 2, kind: input, shape index: {}]   ;;  %s1739_s3 = inlined_call_operand.hbm [shape: bf16[256,256], index: 3, kind: input, shape index: {}]   ;;  %s1740_s4 = inlined_call_operand.vmem [shape: f32[1,256], index: 4, kind: input, shape index: {}]   ;;  %s1741_s5 = inlined_call_operand.hbm [shape: f32[16,256], index: 5, kind: output, shape index: {}]  }
   0x1   :  { %12 = vsyncpa [#allocation3 + $0x1], 0 }
   0x2   :  { %13 = vsyncpa [#allocation6], 0 }
   0x3   :  { %14 = vsyncpa [#allocation9], 0 }
   0x4   :  { %15 = vsyncpa [#allocation4], 0 }
   0x5   :  { %17 = vsyncpa [#allocation4 + $0x1], 0  ;;  %s1569_s18 = smov 0   ;;  %s1571_s19 = smov 0  }
   0x6   :  { %s1573_s20 = smov 0   ;;  %s1575_s21 = smov 0  }
   0x7 LB: > { %s175_s24 = sshll.u32 %s1737_s1, 4  ;;  %s1593_s25 = sadd.s32 4294967295, %s1532_s21   ;;  %s1532_s21 = sphi %s1575_s21, %s1752_s21   ;;  %s1528_s20 = sphi %s1573_s20, %s1751_s20   ;;  %s1524_s19 = sphi %s1571_s19, %s1750_s19   ;;  %s1520_s18 = sphi %s1569_s18, %s1749_s18   ;;  %s176_s24 = int_to_ptr.hbm [resolvable:$true] %s175_s24 }
   0x8   : > { %p918_p0 = scmp.ge.s32.totalorder %s1532_s21, 1  ;;  %p44_p1 = scmp.eq.s32.totalorder %s1593_s25, 0 }
   0x9   : > { %p164_p2 = scmp.lt.s32.totalorder %s1532_s21, 3  ;;  %s1534_s27 = smov [#allocation5]  }
   0xa   : > { %s177_s28 = sshll.u32 %s1534_s27, 4  ;;  %s190_s6 = sshll.u32 %s1738_s2, 4  ;;  %s178_s28 = int_to_ptr.vmem [resolvable:$true] %s177_s28  ;;  %s191_s6 = int_to_ptr.hbm [resolvable:$true] %s190_s6 }
   0xb   : > { %p1598_p3 = pnand %p918_p0, %p164_p2  ;;  %s201_s10 = sshll.u32 %s1739_s3, 4  ;;  %s202_s10 = int_to_ptr.hbm [resolvable:$true] %s201_s10 }
   0xc   : > { %s1535_s11 = smov [#allocation7]   ;;  %s1536_s13 = smov 128  }
   0xd   : > { %p1275_p4 = pneg %p1598_p3  ;;  %s192_s12 = sshll.u32 %s1535_s11, 4  ;;  %s193_s12 = int_to_ptr.vmem [resolvable:$true] %s192_s12 }
   0xe   : > { %s1537_s14 = smov 8   ;;  %s1538_s15 = smov [#allocation8]  }
   0xf   : > { %p1610_p6 = pnand %p1275_p4, %p44_p1  ;;  %s203_s16 = sshll.u32 %s1538_s15, 4  ;;  %s204_s16 = int_to_ptr.vmem [resolvable:$true] %s203_s16 }
  0x10   : > { %s917_s17 = sadd.s32 4294967294, %s1532_s21   ;;  %s1625_s22 = sadd.s32 1, %s1532_s21  }
  0x11   : > { %1278 = dma.hbm_to_vmem [thread:$0]  (!%p1610_p6), %s176_s24, 4096, %s178_s28, [#allocation6], %s1536_s13, %s1536_s13, %s1537_s14  }
  0x12   : > { %1281 = dma.hbm_to_vmem [thread:$0]  (!%p1610_p6), %s191_s6, 32, %s193_s12, [#allocation6]  }
  0x13   : > { %1284 = dma.hbm_to_vmem [thread:$0]  (!%p1610_p6), %s202_s10, 4096, %s204_s16, [#allocation9], %s1536_s13, %s1536_s13, %s1537_s14  }
  0x14   : > { %s30_s23 = sadd.s32 1, %s1528_s20  ;;  %s27_s24 = ssub.s32 %s1532_s21, %s1625_s22 }
  0x15   : > { %p37_p7 = scmp.ne.s32.totalorder %s1528_s20, %s1524_s19  ;;  %p28_p8 = scmp.eq.s32.totalorder %s27_s24, 0 }
  0x16   : > { %p38_p9 = scmp.eq.s32.totalorder %s1532_s21, 0  ;;  %p43_p10 = scmp.ne.s32.totalorder %s1524_s19, %s1520_s18 }
  0x17   : > { %p151_p11 = scmp.eq.s32.totalorder %s1593_s25, 1  ;;  %p157_p0 = scmp.eq.s32.totalorder %s917_s17, 1 }
  0x18   : > { %s1637_s27 = scalar_select %p28_p8, %s1528_s20, %s30_s23  }
  0x19   : > { %p1641_p12 = por %p44_p1, %p43_p10  ;;  %p1645_p13 = por %p151_p11, %p37_p7 }
  0x1a   : > { %p39_p2 = por %p38_p9, %p37_p7  ;;  %s220_s30 = sand.u32 1, %s1528_s20  }
  0x1b   : > { %p1650_p4 = por %p157_p0, %p43_p10  ;;  %p1296_p6 = scmp.lt.s32.totalorder %s1532_s21, 2 }
  0x1c   : > { %s923_s7 = sshll.u32 %s220_s30, 4  ;;  %s1193_s8 = sshll.u32 %s1532_s21, 4 }
  0x1d   : > { %s229_s11 = scalar_lea.hbm %s1736_s0, %s1193_s8  ;;  %s224_s13 = scalar_lea.vmem [#allocation2], %s923_s7 }
  0x1e   : > { %s231_s12 = sshll.u32 %s229_s11, 4  ;;  %s233_s14 = sshll.u32 %s224_s13, 4  ;;  %s232_s12 = int_to_ptr.hbm [resolvable:$true] %s231_s12  ;;  %s234_s14 = int_to_ptr.vmem [resolvable:$true] %s233_s14 }
  0x1f   : > { %p1659_p8 = pnand %p1296_p6, %p39_p2  ;;  %s221_s16 = scalar_lea.sflag [#allocation3], %s220_s30 }
  0x20   : > { %s1428_s17 = sshra.s32 %s232_s12, 4  ;;  %s1435_s7 = scalar_lea.hbm %s1736_s0, 32  ;;  %s1429_s17 = int_to_ptr.hbm [resolvable:$true] %s1428_s17 }
  0x21   : > { %s1430_s23 = scalar_lea.hbm %s1429_s17, 16  ;;  %p1432_p9 = pneg %p1659_p8 }
  0x22   : > { %p1431_p7 = scmp.ne.s32.totalorder %s1429_s17, %s1430_s23  ;;  %p1436_p0 = scmp.lt.s32.totalorder %s1429_s17, %s1736_s0 }
  0x23   : > { %p1437_p2 = scmp.lt.s32.totalorder %s1435_s7, %s1430_s23 }
  0x24   : > { %p1433_p10 = pnand %p1432_p9, %p1431_p7 }
  0x25   : > { %p1438_p6 = por %p1437_p2, %p1436_p0 }
  0x26   : > { %p1434_p11 = pneg %p1433_p10 }
  0x28   : > { %p1439_p5 = pnand %p1438_p6, %p1434_p11 }
  0x2a   : > { %1442 = shalt.err (!%p1439_p5)
}
  0x2b   : > { %1288 = dma.hbm_to_vmem [thread:$0]  (!%p1659_p8), %s232_s12, 256, %s234_s14, %s221_s16  }
  0x2c   : > { %242 = sbr.rel (%p1598_p3) target bundleno = 370 (0x172), region = 40  ;;  %s1676_s30 = sand.u32 (!%p1598_p3), 1, %s1524_s19  }
  0x2d   : > { %s927_s11 = sshll.u32 (!%p1598_p3), %s1676_s30, 4  ;;  %s245_s13 = scalar_lea.sflag (!%p1598_p3), [#allocation3], %s1676_s30 }
  0x2e   : > { %s1682_s17 = scalar_lea.vmem (!%p1598_p3), [#allocation2], %s927_s11 }
  0x31   : > { %1503 = dma.done.wait (%p1641_p12), %s245_s13, 256  }
  0x32   : > { %1505 = vsyncadd (%p1641_p12), %s245_s13, 4294967040 }
  0x33   : > { %1507 = dma.done.wait (%p44_p1), [#allocation6], 4128  }
  0x34   : > { %1509 = vsyncadd (%p44_p1), [#allocation6], 4294963168 }
  0x35   : > { %1511 = dma.done.wait (%p44_p1), [#allocation9], 4096  }
  0x36   : > { %1513 = vsyncadd (%p44_p1), [#allocation9], 4294963200  ;;  %v990_v0 = vld [vmem:[#allocation5 + $0x70] sm:$0xf]  ;;  %v1209_v1 = vld [vmem:[#allocation5 + $0x74] sm:$0xf0] }
  0x37   : > { %v1054_v2 = vld [vmem:[#allocation5 + $0xf0] sm:$0xf]  ;;  %v991_v3 = vor.u32 %v1209_v1, %v990_v0  ;;  %v1225_v4 = vld [vmem:[#allocation5 + $0xf4] sm:$0xf0]  ;;  %v1208_v5 = vld [vmem:[#allocation5 + $0x74] sm:$0xf] }
  0x38   : > { %v992_v6 = vld [vmem:[#allocation5 + $0x78] sm:$0xf0]  ;;  %v1055_v7 = vor.u32 %v1225_v4, %v1054_v2  ;;  %v1224_v9 = vld [vmem:[#allocation5 + $0xf4] sm:$0xf]  ;;  %v982_v11 = vld [vmem:[#allocation5 + $0x60] sm:$0xf] }
  0x39   : > { %v995_v8 = vor.u32 %v1208_v5, %v992_v6  ;;  %v1056_v10 = vld [vmem:[#allocation5 + $0xf8] sm:$0xf0]  ;;  %493 = vmatpush.bf16.msra.mxu0 %v991_v3  ;;  %v1207_v13 = vld [vmem:[#allocation5 + $0x64] sm:$0xf0]  ;;  %v1046_v14 = vld [vmem:[#allocation5 + $0xe0] sm:$0xf] }
  0x3a   : > { %v1059_v12 = vor.u32 %v1224_v9, %v1056_v10  ;;  %v1223_v15 = vld [vmem:[#allocation5 + $0xe4] sm:$0xf0]  ;;  %506 = vmatpush.bf16.msra.mxu1 %v1055_v7  ;;  %v983_v16 = vor.u32 %v1207_v13, %v982_v11  ;;  %v1206_v18 = vld [vmem:[#allocation5 + $0x64] sm:$0xf]  ;;  %v984_v19 = vld [vmem:[#allocation5 + $0x68] sm:$0xf0] }
  0x3b   : > { %519 = vmatpush.bf16.msra.mxu2 %v995_v8  ;;  %v1047_v17 = vor.u32 %v1223_v15, %v1046_v14  ;;  %v1222_v20 = vld [vmem:[#allocation5 + $0xe4] sm:$0xf]  ;;  %v987_v21 = vor.u32 %v1206_v18, %v984_v19  ;;  %v1048_v22 = vld [vmem:[#allocation5 + $0xe8] sm:$0xf0]  ;;  %v974_v23 = vld [vmem:[#allocation5 + $0x50] sm:$0xf] }
  0x3c   : > { %532 = vmatpush.bf16.msra.mxu3 %v1059_v12  ;;  %v1205_v24 = vld [vmem:[#allocation5 + $0x54] sm:$0xf0]  ;;  %v1051_v25 = vor.u32 %v1222_v20, %v1048_v22  ;;  %v1038_v26 = vld [vmem:[#allocation5 + $0xd0] sm:$0xf]  ;;  %v1204_v28 = vld [vmem:[#allocation5 + $0x54] sm:$0xf] }
  0x3d   : > { %v1221_v27 = vld [vmem:[#allocation5 + $0xd4] sm:$0xf0]  ;;  %494 = vmatpush.bf16.msra.mxu0 %v983_v16  ;;  %v975_v29 = vor.u32 %v1205_v24, %v974_v23  ;;  %v976_v30 = vld [vmem:[#allocation5 + $0x58] sm:$0xf0]  ;;  %v1220_v31 = vld [vmem:[#allocation5 + $0xd4] sm:$0xf] }
  0x3e   : > { %v1040_v32 = vld [vmem:[#allocation5 + $0xd8] sm:$0xf0]  ;;  %507 = vmatpush.bf16.msra.mxu1 %v1047_v17  ;;  %v1039_v33 = vor.u32 %v1221_v27, %v1038_v26  ;;  %v979_v34 = vor.u32 %v1204_v28, %v976_v30  ;;  %v966_v35 = vld [vmem:[#allocation5 + $0x40] sm:$0xf]  ;;  %v1203_v36 = vld [vmem:[#allocation5 + $0x44] sm:$0xf0] }
  0x3f   : > { %520 = vmatpush.bf16.msra.mxu2 %v987_v21  ;;  %v1030_v37 = vld [vmem:[#allocation5 + $0xc0] sm:$0xf]  ;;  %v1043_v38 = vor.u32 %v1220_v31, %v1040_v32  ;;  %v1219_v39 = vld [vmem:[#allocation5 + $0xc4] sm:$0xf0]  ;;  %v1202_v40 = vld [vmem:[#allocation5 + $0x44] sm:$0xf]  ;;  %v967_v44 = vor.u32 %v1203_v36, %v966_v35 }
  0x40   : > { %533 = vmatpush.bf16.msra.mxu3 %v1051_v25  ;;  %v968_v41 = vld [vmem:[#allocation5 + $0x48] sm:$0xf0]  ;;  %v1218_v42 = vld [vmem:[#allocation5 + $0xc4] sm:$0xf]  ;;  %v1031_v45 = vor.u32 %v1219_v39, %v1030_v37  ;;  %v958_v47 = vld [vmem:[#allocation5 + $0x30] sm:$0xf] }
  0x41   : > { %v1032_v43 = vld [vmem:[#allocation5 + $0xc8] sm:$0xf0]  ;;  %495 = vmatpush.bf16.msra.mxu0 %v975_v29  ;;  %v971_v46 = vor.u32 %v1202_v40, %v968_v41  ;;  %v1201_v48 = vld [vmem:[#allocation5 + $0x34] sm:$0xf0]  ;;  %v1022_v49 = vld [vmem:[#allocation5 + $0xb0] sm:$0xf] }
  0x42   : > { %508 = vmatpush.bf16.msra.mxu1 %v1039_v33  ;;  %v1035_v50 = vor.u32 %v1218_v42, %v1032_v43  ;;  %v1217_v51 = vld [vmem:[#allocation5 + $0xb4] sm:$0xf0]  ;;  %v1200_v52 = vld [vmem:[#allocation5 + $0x34] sm:$0xf]  ;;  %v960_v53 = vld [vmem:[#allocation5 + $0x38] sm:$0xf0]  ;;  %v959_v56 = vor.u32 %v1201_v48, %v958_v47 }
  0x43   : > { %521 = vmatpush.bf16.msra.mxu2 %v979_v34  ;;  %v1216_v54 = vld [vmem:[#allocation5 + $0xb4] sm:$0xf]  ;;  %v1024_v55 = vld [vmem:[#allocation5 + $0xb8] sm:$0xf0]  ;;  %v1023_v57 = vor.u32 %v1217_v51, %v1022_v49  ;;  %v963_v58 = vor.u32 %v1200_v52, %v960_v53  ;;  %v950_v59 = vld [vmem:[#allocation5 + $0x20] sm:$0xf] }
  0x44   : > { %534 = vmatpush.bf16.msra.mxu3 %v1043_v38  ;;  %v1199_v60 = vld [vmem:[#allocation5 + $0x24] sm:$0xf0]  ;;  %v1014_v61 = vld [vmem:[#allocation5 + $0xa0] sm:$0xf]  ;;  %v1027_v62 = vor.u32 %v1216_v54, %v1024_v55  ;;  %v1198_v0 = vld [vmem:[#allocation5 + $0x24] sm:$0xf] }
  0x45   : > { %496 = vmatpush.bf16.msra.mxu0 %v967_v44  ;;  %v1215_v63 = vld [vmem:[#allocation5 + $0xa4] sm:$0xf0]  ;;  %v952_v1 = vld [vmem:[#allocation5 + $0x28] sm:$0xf0]  ;;  %v1214_v2 = vld [vmem:[#allocation5 + $0xa4] sm:$0xf]  ;;  %v951_v4 = vor.u32 %v1199_v60, %v950_v59 }
  0x46   : > { %509 = vmatpush.bf16.msra.mxu1 %v1031_v45  ;;  %v1016_v3 = vld [vmem:[#allocation5 + $0xa8] sm:$0xf0]  ;;  %v1015_v5 = vor.u32 %v1215_v63, %v1014_v61  ;;  %v955_v6 = vor.u32 %v1198_v0, %v952_v1  ;;  %v942_v7 = vld [vmem:[#allocation5 + $0x10] sm:$0xf]  ;;  %v1197_v8 = vld [vmem:[#allocation5 + $0x14] sm:$0xf0] }
  0x47   : > { %522 = vmatpush.bf16.msra.mxu2 %v971_v46  ;;  %v1006_v9 = vld [vmem:[#allocation5 + $0x90] sm:$0xf]  ;;  %v1019_v10 = vor.u32 %v1214_v2, %v1016_v3  ;;  %v1213_v11 = vld [vmem:[#allocation5 + $0x94] sm:$0xf0]  ;;  %v1196_v12 = vld [vmem:[#allocation5 + $0x14] sm:$0xf]  ;;  %v943_v16 = vor.u32 %v1197_v8, %v942_v7 }
  0x48   : > { %535 = vmatpush.bf16.msra.mxu3 %v1035_v50  ;;  %v944_v13 = vld [vmem:[#allocation5 + $0x18] sm:$0xf0]  ;;  %v1212_v14 = vld [vmem:[#allocation5 + $0x94] sm:$0xf]  ;;  %v934_v17 = vld [vmem:[#allocation5] sm:$0xf]  ;;  %v1007_v18 = vor.u32 %v1213_v11, %v1006_v9 }
  0x49   : > { %497 = vmatpush.bf16.msra.mxu0 %v959_v56  ;;  %v1008_v15 = vld [vmem:[#allocation5 + $0x98] sm:$0xf0]  ;;  %v947_v19 = vor.u32 %v1196_v12, %v944_v13  ;;  %v1195_v20 = vld [vmem:[#allocation5 + $0x4] sm:$0xf0]  ;;  %v998_v21 = vld [vmem:[#allocation5 + $0x80] sm:$0xf] }
  0x4a   : > { %510 = vmatpush.bf16.msra.mxu1 %v1023_v57  ;;  %v1211_v22 = vld [vmem:[#allocation5 + $0x84] sm:$0xf0]  ;;  %v1011_v23 = vor.u32 %v1212_v14, %v1008_v15  ;;  %v1194_v24 = vld [vmem:[#allocation5 + $0x4] sm:$0xf]  ;;  %v936_v25 = vld [vmem:[#allocation5 + $0x8] sm:$0xf0]  ;;  %v935_v30 = vor.u32 %v1195_v20, %v934_v17 }
  0x4b   : > { %523 = vmatpush.bf16.msra.mxu2 %v963_v58  ;;  %v1210_v26 = vld [vmem:[#allocation5 + $0x84] sm:$0xf]  ;;  %v1000_v27 = vld [vmem:[#allocation5 + $0x88] sm:$0xf0]  ;;  %v1118_v28 = vld [vmem:[#allocation8 + $0x70] sm:$0xf]  ;;  %v999_v34 = vor.u32 %v1211_v22, %v998_v21  ;;  %v939_v35 = vor.u32 %v1194_v24, %v936_v25 }
  0x4c   : > { %536 = vmatpush.bf16.msra.mxu3 %v1027_v62  ;;  %v1241_v29 = vld [vmem:[#allocation8 + $0x74] sm:$0xf0]  ;;  %v291_v31 = vld [vmem:[%s1682_s17] sm:$0xff]  ;;  %v1003_v37 = vor.u32 %v1210_v26, %v1000_v27  ;;  %v1239_v44 = vld [vmem:[#allocation8 + $0x64] sm:$0xf0]  ;;  %s1258_s12 = sshll.u32 %s1593_s25, 4 }
  0x4d   : > { %498 = vmatpush.bf16.msra.mxu0 %v951_v4  ;;  %v1240_v32 = vld [vmem:[#allocation8 + $0x74] sm:$0xf]  ;;  %v1120_v33 = vld [vmem:[#allocation8 + $0x78] sm:$0xf0]  ;;  %v1119_v38 = vor.u32 %v1241_v29, %v1118_v28  ;;  %v1110_v39 = vld [vmem:[#allocation8 + $0x60] sm:$0xf]  ;;  %v293_v42 = vpack.c.bf16 %v291_v31, %v291_v31  ;;  %s813_s16 = scalar_lea.hbm %s1741_s5, %s1258_s12 }
  0x4e   : > { %511 = vmatpush.bf16.msra.mxu1 %v1015_v5  ;;  %v292_v36 = vld [vmem:[%s1682_s17 + $0x8] sm:$0xff]  ;;  %v1182_v40 = vld [vmem:[#allocation8 + $0xf0] sm:$0xf]  ;;  %v1123_v43 = vor.u32 %v1240_v32, %v1120_v33  ;;  %v1111_v51 = vor.u32 %v1239_v44, %v1110_v39  ;;  %v1174_v54 = vld [vmem:[#allocation8 + $0xe0] sm:$0xf]  ;;  %s290_s23 = scalar_lea.vmem [#allocation10], %s927_s11 }
  0x4f   : > { %524 = vmatpush.bf16.msra.mxu2 %v955_v6  ;;  %v1257_v41 = vld [vmem:[#allocation8 + $0xf4] sm:$0xf0]  ;;  %v1256_v45 = vld [vmem:[#allocation8 + $0xf4] sm:$0xf]  ;;  %v1184_v46 = vld [vmem:[#allocation8 + $0xf8] sm:$0xf0]  ;;  %v294_v47 = vpack.c.bf16 %v292_v36, %v292_v36 }
  0x50   : > { %537 = vmatpush.bf16.msra.mxu3 %v1019_v10  ;;  %v1238_v48 = vld [vmem:[#allocation8 + $0x64] sm:$0xf]  ;;  %v1112_v49 = vld [vmem:[#allocation8 + $0x68] sm:$0xf0]  ;;  %v1183_v50 = vor.u32 %v1257_v41, %v1182_v40  ;;  %v1187_v52 = vor.u32 %v1256_v45, %v1184_v46  ;;  %v1102_v53 = vld [vmem:[#allocation8 + $0x50] sm:$0xf] }
  0x51   : > { %499 = vmatpush.bf16.msra.mxu0 %v943_v16  ;;  %v1255_v55 = vld [vmem:[#allocation8 + $0xe4] sm:$0xf0]  ;;  %v1115_v56 = vor.u32 %v1238_v48, %v1112_v49  ;;  %v1237_v57 = vld [vmem:[#allocation8 + $0x54] sm:$0xf0]  ;;  %v1254_v58 = vld [vmem:[#allocation8 + $0xe4] sm:$0xf] }
  0x52   : > { %512 = vmatpush.bf16.msra.mxu1 %v1007_v18  ;;  %v1176_v59 = vld [vmem:[#allocation8 + $0xe8] sm:$0xf0]  ;;  %v1236_v60 = vld [vmem:[#allocation8 + $0x54] sm:$0xf]  ;;  %v1104_v61 = vld [vmem:[#allocation8 + $0x58] sm:$0xf0]  ;;  %v1175_v62 = vor.u32 %v1255_v55, %v1174_v54  ;;  %v1103_v63 = vor.u32 %v1237_v57, %v1102_v53 }
  0x53   : > { %525 = vmatpush.bf16.msra.mxu2 %v947_v19  ;;  %v1179_v0 = vor.u32 %v1254_v58, %v1176_v59  ;;  %v1094_v1 = vld [vmem:[#allocation8 + $0x40] sm:$0xf]  ;;  %v1166_v2 = vld [vmem:[#allocation8 + $0xd0] sm:$0xf]  ;;  %v1253_v3 = vld [vmem:[#allocation8 + $0xd4] sm:$0xf0]  ;;  %v1107_v4 = vor.u32 %v1236_v60, %v1104_v61 }
  0x54   : > { %538 = vmatpush.bf16.msra.mxu3 %v1011_v23  ;;  %v1235_v5 = vld [vmem:[#allocation8 + $0x44] sm:$0xf0]  ;;  %v1252_v6 = vld [vmem:[#allocation8 + $0xd4] sm:$0xf]  ;;  %v1168_v7 = vld [vmem:[#allocation8 + $0xd8] sm:$0xf0]  ;;  %v1167_v10 = vor.u32 %v1253_v3, %v1166_v2 }
  0x55   : > { %500 = vmatpush.bf16.msra.mxu0 %v935_v30  ;;  %v1234_v8 = vld [vmem:[#allocation8 + $0x44] sm:$0xf]  ;;  %v1096_v9 = vld [vmem:[#allocation8 + $0x48] sm:$0xf0]  ;;  %v1095_v11 = vor.u32 %v1235_v5, %v1094_v1  ;;  %v1171_v12 = vor.u32 %v1252_v6, %v1168_v7  ;;  %v1086_v13 = vld [vmem:[#allocation8 + $0x30] sm:$0xf] }
  0x56   : > { %513 = vmatpush.bf16.msra.mxu1 %v999_v34  ;;  %v1158_v14 = vld [vmem:[#allocation8 + $0xc0] sm:$0xf]  ;;  %v1251_v15 = vld [vmem:[#allocation8 + $0xc4] sm:$0xf0]  ;;  %v1099_v16 = vor.u32 %v1234_v8, %v1096_v9  ;;  %v1233_v17 = vld [vmem:[#allocation8 + $0x34] sm:$0xf0] }
  0x57   : > { %526 = vmatpush.bf16.msra.mxu2 %v939_v35  ;;  %v1250_v18 = vld [vmem:[#allocation8 + $0xc4] sm:$0xf]  ;;  %v1160_v19 = vld [vmem:[#allocation8 + $0xc8] sm:$0xf0]  ;;  %v1232_v20 = vld [vmem:[#allocation8 + $0x34] sm:$0xf]  ;;  %v1159_v22 = vor.u32 %v1251_v15, %v1158_v14  ;;  %v1087_v23 = vor.u32 %v1233_v17, %v1086_v13 }
  0x58   : > { %539 = vmatpush.bf16.msra.mxu3 %v1003_v37  ;;  %501 = vmatmul.bf16.vlgmr.msra.gmra.mxu0 %v293_v42  ;;  %v1088_v21 = vld [vmem:[#allocation8 + $0x38] sm:$0xf0]  ;;  %v1163_v24 = vor.u32 %v1250_v18, %v1160_v19  ;;  %v1078_v26 = vld [vmem:[#allocation8 + $0x20] sm:$0xf]  ;;  %v1231_v27 = vld [vmem:[#allocation8 + $0x24] sm:$0xf0] }
  0x59   : > { %747 = vmatpush.bf16.msrb.mxu0 %v1119_v38  ;;  %514 = vmatmul.bf16.vlgmr.msra.gmra.mxu1 %v294_v47  ;;  %v1091_v25 = vor.u32 %v1232_v20, %v1088_v21  ;;  %v1230_v28 = vld [vmem:[#allocation8 + $0x24] sm:$0xf]  ;;  %v1080_v29 = vld [vmem:[#allocation8 + $0x28] sm:$0xf0]  ;;  %v1079_v30 = vor.u32 %v1231_v27, %v1078_v26  ;;  %v1150_v32 = vld [vmem:[#allocation8 + $0xb0] sm:$0xf] }
  0x5a   : > { %527 = vmatmul.bf16.vlgmr.msra.gmra.mxu2 %v293_v42  ;;  %760 = vmatpush.bf16.msrb.mxu1 %v1183_v50  ;;  %v1083_v31 = vor.u32 %v1230_v28, %v1080_v29  ;;  %v1249_v33 = vld [vmem:[#allocation8 + $0xb4] sm:$0xf0]  ;;  %v1248_v34 = vld [vmem:[#allocation8 + $0xb4] sm:$0xf]  ;;  %v1152_v36 = vld [vmem:[#allocation8 + $0xb8] sm:$0xf0] }
  0x5b   : > { %773 = vmatpush.bf16.msrb.mxu2 %v1123_v43  ;;  %540 = vmatmul.bf16.vlgmr.msra.gmra.mxu3 %v294_v47  ;;  %v1151_v35 = vor.u32 %v1249_v33, %v1150_v32  ;;  %v1155_v37 = vor.u32 %v1248_v34, %v1152_v36  ;;  %v1070_v38 = vld [vmem:[#allocation8 + $0x10] sm:$0xf]  ;;  %v1229_v39 = vld [vmem:[#allocation8 + $0x14] sm:$0xf0]  ;;  %v1228_v40 = vld [vmem:[#allocation8 + $0x14] sm:$0xf] }
  0x5c   : > { %786 = vmatpush.bf16.msrb.mxu3 %v1187_v52  ;;  %v1071_v41 = vor.u32 %v1229_v39, %v1070_v38  ;;  %v1072_v42 = vld [vmem:[#allocation8 + $0x18] sm:$0xf0]  ;;  %v1142_v44 = vld [vmem:[#allocation8 + $0xa0] sm:$0xf]  ;;  %v1247_v45 = vld [vmem:[#allocation8 + $0xa4] sm:$0xf0] }
  0x5d   : > { %748 = vmatpush.bf16.msrb.mxu0 %v1111_v51  ;;  %v1075_v43 = vor.u32 %v1228_v40, %v1072_v42  ;;  %v1246_v46 = vld [vmem:[#allocation8 + $0xa4] sm:$0xf]  ;;  %v1143_v47 = vor.u32 %v1247_v45, %v1142_v44  ;;  %v1144_v48 = vld [vmem:[#allocation8 + $0xa8] sm:$0xf0]  ;;  %v1062_v50 = vld [vmem:[#allocation8] sm:$0xf] }
  0x5e   : > { %761 = vmatpush.bf16.msrb.mxu1 %v1175_v62  ;;  %v1147_v49 = vor.u32 %v1246_v46, %v1144_v48  ;;  %v1227_v51 = vld [vmem:[#allocation8 + $0x4] sm:$0xf0]  ;;  %v1226_v52 = vld [vmem:[#allocation8 + $0x4] sm:$0xf]  ;;  %v1064_v54 = vld [vmem:[#allocation8 + $0x8] sm:$0xf0] }
  0x5f   : > { %774 = vmatpush.bf16.msrb.mxu2 %v1115_v56  ;;  %v1063_v53 = vor.u32 %v1227_v51, %v1062_v50  ;;  %v1067_v55 = vor.u32 %v1226_v52, %v1064_v54  ;;  %v1134_v56 = vld [vmem:[#allocation8 + $0x90] sm:$0xf]  ;;  %v1245_v57 = vld [vmem:[#allocation8 + $0x94] sm:$0xf0]  ;;  %v1244_v59 = vld [vmem:[#allocation8 + $0x94] sm:$0xf] }
  0x60   : > { %787 = vmatpush.bf16.msrb.mxu3 %v1179_v0  ;;  %v1135_v58 = vor.u32 %v1245_v57, %v1134_v56  ;;  %v1136_v60 = vld [vmem:[#allocation8 + $0x98] sm:$0xf0]  ;;  %v1126_v62 = vld [vmem:[#allocation8 + $0x80] sm:$0xf]  ;;  %v1242_v0 = vld [vmem:[#allocation8 + $0x84] sm:$0xf] }
  0x61   : > { %749 = vmatpush.bf16.msrb.mxu0 %v1103_v63  ;;  %v1139_v61 = vor.u32 %v1244_v59, %v1136_v60  ;;  %v1243_v63 = vld [vmem:[#allocation8 + $0x84] sm:$0xf0]  ;;  %v1128_v2 = vld [vmem:[#allocation8 + $0x88] sm:$0xf0]  ;;  %s815_s24 = sshll.u32 %s290_s23, 4  ;;  %s817_s8 = sshll.u32 %s813_s16, 4  ;;  %s816_s24 = int_to_ptr.vmem [resolvable:$true] %s815_s24  ;;  %s818_s8 = int_to_ptr.hbm [resolvable:$true] %s817_s8 }
  0x62   : > { %762 = vmatpush.bf16.msrb.mxu1 %v1167_v10  ;;  %v1127_v1 = vor.u32 %v1243_v63, %v1126_v62  ;;  %v1131_v3 = vor.u32 %v1242_v0, %v1128_v2  ;;  %s802_s25 = scalar_lea.sflag [#allocation4], %s1676_s30  ;;  %s1472_s7 = sshra.s32 %s818_s8, 4  ;;  %s1473_s7 = int_to_ptr.hbm [resolvable:$true] %s1472_s7 }
  0x63   : > { %775 = vmatpush.bf16.msrb.mxu2 %v1107_v4  ;;  %v327_v4 = vld [vmem:[#allocation7] sm:$0x3]  ;;  %s1474_s9 = scalar_lea.hbm %s1473_s7, 16  ;;  %s1478_s13 = scalar_lea.hbm %s1741_s5, 32 }
  0x64   : > { %788 = vmatpush.bf16.msrb.mxu3 %v1171_v12  ;;  %v329_v5 = vperm.slane %v327_v4, 0  ;;  %v330_v10 = vperm.slane %v327_v4, 1  ;;  %p1475_p1 = scmp.ne.s32.totalorder %s1473_s7, %s1474_s9  ;;  %p1479_p12 = scmp.lt.s32.totalorder %s1473_s7, %s1741_s5 }
  0x65   : > { %750 = vmatpush.bf16.msrb.mxu0 %v1095_v11  ;;  %p1480_p8 = scmp.lt.s32.totalorder %s1478_s13, %s1474_s9 }
  0x66   : > { %763 = vmatpush.bf16.msrb.mxu1 %v1159_v22  ;;  %p1476_p3 = pnand %p1475_p1, %p1645_p13 }
  0x67   : > { %776 = vmatpush.bf16.msrb.mxu2 %v1099_v16  ;;  %p1481_p7 = por %p1480_p8, %p1479_p12 }
  0x68   : > { %789 = vmatpush.bf16.msrb.mxu3 %v1163_v24  ;;  %p1477_p5 = pneg %p1476_p3 }
  0x69   : > { %751 = vmatpush.bf16.msrb.mxu0 %v1087_v23  ;;  %v581_v23 = vld [vmem:[%s1740_s4] sm:$0x3] }
  0x6a   : > { %764 = vmatpush.bf16.msrb.mxu1 %v1151_v35  ;;  %v583_v24 = vperm.slane %v581_v23, 0  ;;  %v584_v27 = vperm.slane %v581_v23, 1  ;;  %p1482_p9 = pnand %p1481_p7, %p1477_p5 }
  0x6b   : > { %777 = vmatpush.bf16.msrb.mxu2 %v1091_v25 }
  0x6c   : > { %790 = vmatpush.bf16.msrb.mxu3 %v1155_v37 }
  0x6d   : > { %752 = vmatpush.bf16.msrb.mxu0 %v1079_v30 }
  0x6e   : > { %765 = vmatpush.bf16.msrb.mxu1 %v1143_v47 }
  0x6f   : > { %778 = vmatpush.bf16.msrb.mxu2 %v1083_v31 }
  0x70   : > { %791 = vmatpush.bf16.msrb.mxu3 %v1147_v49 }
  0x71   : > { %753 = vmatpush.bf16.msrb.mxu0 %v1071_v41 }
  0x72   : > { %766 = vmatpush.bf16.msrb.mxu1 %v1135_v58 }
  0x73   : > { %779 = vmatpush.bf16.msrb.mxu2 %v1075_v43 }
  0x74   : > { %792 = vmatpush.bf16.msrb.mxu3 %v1139_v61 }
  0x75   : > { %754 = vmatpush.bf16.msrb.mxu0 %v1063_v53 }
  0x76   : > { %767 = vmatpush.bf16.msrb.mxu1 %v1127_v1 }
  0x77   : > { %780 = vmatpush.bf16.msrb.mxu2 %v1067_v55 }
  0x78   : > { %793 = vmatpush.bf16.msrb.mxu3 %v1131_v3 }
  0xd5   : > { %v502_v6 = vpop.f32.mrf.mxu0 }
  0xd6   : > { %v503_v7 = vadd.f32 %v502_v6, %v329_v5  ;;  %v515_v8 = vpop.f32.mrf.mxu1 }
  0xd8   : > { %v516_v9 = vadd.f32 %v515_v8, %v503_v7 }
  0xda   : > { %v545_v11 = vmax.f32 %v516_v9, 0.0 }
  0xdc   : > { %v547_v12 = vpack.c.bf16 %v545_v11, %v545_v11 }
  0xdd   : > { %v528_v13 = vpop.f32.mrf.mxu2  ;;  %v504_v16 = vpop.f32.mrf.mxu0 }
  0xde   : > { %v529_v14 = vadd.f32 %v528_v13, %v330_v10  ;;  %v541_v15 = vpop.f32.mrf.mxu3  ;;  %v517_v17 = vpop.f32.mrf.mxu1  ;;  %755 = vmatmul.bf16.vlgmr.msrb.gmra.mxu0 %v547_v12  ;;  %781 = vmatmul.bf16.vlgmr.msrb.gmra.mxu2 %v547_v12 }
  0xe0   : > { %v542_v18 = vadd.f32 %v541_v15, %v529_v14 }
  0xe2   : > { %v546_v19 = vmax.f32 %v542_v18, 0.0 }
  0xe4   : > { %v548_v20 = vpack.c.bf16 %v546_v19, %v546_v19 }
  0xe5   : > { %v530_v21 = vpop.f32.mrf.mxu2 }
  0xe6   : > { %v543_v22 = vpop.f32.mrf.mxu3  ;;  %768 = vmatmul.bf16.vlgmr.msrb.gmra.mxu1 %v548_v20  ;;  %794 = vmatmul.bf16.vlgmr.msrb.gmra.mxu3 %v548_v20 }
 0x15b   : > { %v756_v25 = vpop.f32.mrf.mxu0 }
 0x15c   : > { %v757_v26 = vadd.f32 %v756_v25, %v583_v24 }
 0x161   : > { %v782_v28 = vpop.f32.mrf.mxu2 }
 0x162   : > { %v783_v32 = vadd.f32 %v782_v28, %v584_v27 }
 0x163   : > { %v769_v29 = vpop.f32.mrf.mxu1  ;;  %v758_v31 = vpop.f32.mrf.mxu0 }
 0x164   : > { %v770_v30 = vadd.f32 %v769_v29, %v757_v26 }
 0x166   : > { %799 = vst [vmem:[%s290_s23] sm:$0xff] %v770_v30 }
 0x169   : > { %v795_v33 = vpop.f32.mrf.mxu3  ;;  %v784_v35 = vpop.f32.mrf.mxu2 }
 0x16a   : > { %v796_v34 = vadd.f32 %v795_v33, %v783_v32 }
 0x16b   : > { %v771_v36 = vpop.f32.mrf.mxu1 }
 0x16c   : > { %800 = vst [vmem:[%s290_s23 + $0x8] sm:$0xff] %v796_v34 }
 0x16d   : > { %1485 = shalt.err (!%p1482_p9)
}
 0x16e   : > { %1273 = dma.vmem_to_hbm [thread:$0]  (%p1645_p13), %s816_s24, 256, %s818_s8, %s802_s25  }
 0x171   : > { %v797_v37 = vpop.f32.mrf.mxu3 }
 0x172 PF: > { %s829_s30 = sand.u32 1, %s1520_s18   ;;  %p1748_p10 = scmp.ge.s32.totalorder %s1532_s21, 2 }
 0x173   : > { %s830_s28 = scalar_lea.sflag [#allocation4], %s829_s30 }
 0x174   : > { %p1290_p11 = pnand %p1748_p10, %p1650_p4 }
 0x176   : > { %p1291_p0 = pneg %p1290_p11 }
 0x178   : > { %1515 = dma.done.wait (%p1291_p0), %s830_s28, 256  }
 0x179   : > { %1517 = vsyncadd (%p1291_p0), %s830_s28, 4294967040  ;;  %p20_p2 = scmp.ge.s32.totalorder %s1625_s22, 4   ;;  %s1749_s18 = smov %s1524_s19 }
 0x17a   : > { %s1750_s19 = smov %s1528_s20  ;;  %s1751_s20 = smov %s1637_s27 }
 0x17b   : > { %s1752_s21 = smov %s1625_s22  ;;  %22 = sbr.rel (!%p20_p2) target bundleno = 7 (0x7), region = 97 }
 0x180   :  { %836 = vsyncpa [#allocation3], 1 }
 0x181   :  { %838 = vsyncpa [#allocation3 + $0x1], 1 }
 0x182   :  { %839 = vsyncpa [#allocation6], 1 }
 0x183   :  { %840 = vsyncpa [#allocation9], 1 }
 0x184   :  { %841 = vsyncpa [#allocation4], 1 }
 0x185   :  { %843 = vsyncpa [#allocation4 + $0x1], 1 }

// kernel: tpu_custom_call.1
= control target key start
LH: loop header
LB: loop body
LE: loop exit
PB: predicated region body
PF: predicated region fallthrough
CT: control target
= control target key end

     0   :  { %10 = vsyncpa [#allocation3], 0  ;;  %s1736_s0 = inlined_call_operand.hbm [shape: f32[16,256], index: 0, kind: input, shape index: {}]   ;;  %s1737_s1 = inlined_call_operand.hbm [shape: bf16[256,256], index: 1, kind: input, shape index: {}]   ;;  %s1738_s2 = inlined_call_operand.hbm [shape: f32[1,256], index: 2, kind: input, shape index: {}]   ;;  %s1739_s3 = inlined_call_operand.hbm [shape: bf16[256,256], index: 3, kind: input, shape index: {}]   ;;  %s1740_s4 = inlined_call_operand.vmem [shape: f32[1,256], index: 4, kind: input, shape index: {}]   ;;  %s1741_s5 = inlined_call_operand.hbm [shape: f32[16,256], index: 5, kind: output, shape index: {}]  }
   0x1   :  { %12 = vsyncpa [#allocation3 + $0x1], 0 }
   0x2   :  { %13 = vsyncpa [#allocation6], 0 }
   0x3   :  { %14 = vsyncpa [#allocation9], 0 }
   0x4   :  { %15 = vsyncpa [#allocation4], 0 }
   0x5   :  { %17 = vsyncpa [#allocation4 + $0x1], 0  ;;  %s1569_s18 = smov 0   ;;  %s1571_s19 = smov 0  }
   0x6   :  { %s1573_s20 = smov 0   ;;  %s1575_s21 = smov 0  }
   0x7 LB: > { %s175_s24 = sshll.u32 %s1737_s1, 4  ;;  %s1593_s25 = sadd.s32 4294967295, %s1532_s21   ;;  %s1532_s21 = sphi %s1575_s21, %s1752_s21   ;;  %s1528_s20 = sphi %s1573_s20, %s1751_s20   ;;  %s1524_s19 = sphi %s1571_s19, %s1750_s19   ;;  %s1520_s18 = sphi %s1569_s18, %s1749_s18   ;;  %s176_s24 = int_to_ptr.hbm [resolvable:$true] %s175_s24 }
   0x8   : > { %p918_p0 = scmp.ge.s32.totalorder %s1532_s21, 1  ;;  %p44_p1 = scmp.eq.s32.totalorder %s1593_s25, 0 }
   0x9   : > { %p164_p2 = scmp.lt.s32.totalorder %s1532_s21, 3  ;;  %s1534_s27 = smov [#allocation5]  }
   0xa   : > { %s177_s28 = sshll.u32 %s1534_s27, 4  ;;  %s190_s6 = sshll.u32 %s1738_s2, 4  ;;  %s178_s28 = int_to_ptr.vmem [resolvable:$true] %s177_s28  ;;  %s191_s6 = int_to_ptr.hbm [resolvable:$true] %s190_s6 }
   0xb   : > { %p1598_p3 = pnand %p918_p0, %p164_p2  ;;  %s201_s10 = sshll.u32 %s1739_s3, 4  ;;  %s202_s10 = int_to_ptr.hbm [resolvable:$true] %s201_s10 }
   0xc   : > { %s1535_s11 = smov [#allocation7]   ;;  %s1536_s13 = smov 128  }
   0xd   : > { %p1275_p4 = pneg %p1598_p3  ;;  %s192_s12 = sshll.u32 %s1535_s11, 4  ;;  %s193_s12 = int_to_ptr.vmem [resolvable:$true] %s192_s12 }
   0xe   : > { %s1537_s14 = smov 8   ;;  %s1538_s15 = smov [#allocation8]  }
   0xf   : > { %p1610_p6 = pnand %p1275_p4, %p44_p1  ;;  %s203_s16 = sshll.u32 %s1538_s15, 4  ;;  %s204_s16 = int_to_ptr.vmem [resolvable:$true] %s203_s16 }
  0x10   : > { %s917_s17 = sadd.s32 4294967294, %s1532_s21   ;;  %s1625_s22 = sadd.s32 1, %s1532_s21  }
  0x11   : > { %1278 = dma.hbm_to_vmem [thread:$0]  (!%p1610_p6), %s176_s24, 4096, %s178_s28, [#allocation6], %s1536_s13, %s1536_s13, %s1537_s14  }
  0x12   : > { %1281 = dma.hbm_to_vmem [thread:$0]  (!%p1610_p6), %s191_s6, 32, %s193_s12, [#allocation6]  }
  0x13   : > { %1284 = dma.hbm_to_vmem [thread:$0]  (!%p1610_p6), %s202_s10, 4096, %s204_s16, [#allocation9], %s1536_s13, %s1536_s13, %s1537_s14  }
  0x14   : > { %s30_s23 = sadd.s32 1, %s1528_s20  ;;  %s27_s24 = ssub.s32 %s1532_s21, %s1625_s22 }
  0x15   : > { %p37_p7 = scmp.ne.s32.totalorder %s1528_s20, %s1524_s19  ;;  %p28_p8 = scmp.eq.s32.totalorder %s27_s24, 0 }
  0x16   : > { %p38_p9 = scmp.eq.s32.totalorder %s1532_s21, 0  ;;  %p43_p10 = scmp.ne.s32.totalorder %s1524_s19, %s1520_s18 }
  0x17   : > { %p151_p11 = scmp.eq.s32.totalorder %s1593_s25, 1  ;;  %p157_p0 = scmp.eq.s32.totalorder %s917_s17, 1 }
  0x18   : > { %s1637_s27 = scalar_select %p28_p8, %s1528_s20, %s30_s23  }
  0x19   : > { %p1641_p12 = por %p44_p1, %p43_p10  ;;  %p1645_p13 = por %p151_p11, %p37_p7 }
  0x1a   : > { %p39_p2 = por %p38_p9, %p37_p7  ;;  %s220_s30 = sand.u32 1, %s1528_s20  }
  0x1b   : > { %p1650_p4 = por %p157_p0, %p43_p10  ;;  %p1296_p6 = scmp.lt.s32.totalorder %s1532_s21, 2 }
  0x1c   : > { %s923_s7 = sshll.u32 %s220_s30, 4  ;;  %s1193_s8 = sshll.u32 %s1532_s21, 4 }
  0x1d   : > { %s229_s11 = scalar_lea.hbm %s1736_s0, %s1193_s8  ;;  %s224_s13 = scalar_lea.vmem [#allocation2], %s923_s7 }
  0x1e   : > { %s231_s12 = sshll.u32 %s229_s11, 4  ;;  %s233_s14 = sshll.u32 %s224_s13, 4  ;;  %s232_s12 = int_to_ptr.hbm [resolvable:$true] %s231_s12  ;;  %s234_s14 = int_to_ptr.vmem [resolvable:$true] %s233_s14 }
  0x1f   : > { %p1659_p8 = pnand %p1296_p6, %p39_p2  ;;  %s221_s16 = scalar_lea.sflag [#allocation3], %s220_s30 }
  0x20   : > { %s1428_s17 = sshra.s32 %s232_s12, 4  ;;  %s1435_s7 = scalar_lea.hbm %s1736_s0, 32  ;;  %s1429_s17 = int_to_ptr.hbm [resolvable:$true] %s1428_s17 }
  0x21   : > { %s1430_s23 = scalar_lea.hbm %s1429_s17, 16  ;;  %p1432_p9 = pneg %p1659_p8 }
  0x22   : > { %p1431_p7 = scmp.ne.s32.totalorder %s1429_s17, %s1430_s23  ;;  %p1436_p0 = scmp.lt.s32.totalorder %s1429_s17, %s1736_s0 }
  0x23   : > { %p1437_p2 = scmp.lt.s32.totalorder %s1435_s7, %s1430_s23 }
  0x24   : > { %p1433_p10 = pnand %p1432_p9, %p1431_p7 }
  0x25   : > { %p1438_p6 = por %p1437_p2, %p1436_p0 }
  0x26   : > { %p1434_p11 = pneg %p1433_p10 }
  0x28   : > { %p1439_p5 = pnand %p1438_p6, %p1434_p11 }
  0x2a   : > { %1442 = shalt.err (!%p1439_p5)
}
  0x2b   : > { %1288 = dma.hbm_to_vmem [thread:$0]  (!%p1659_p8), %s232_s12, 256, %s234_s14, %s221_s16  }
  0x2c   : > { %242 = sbr.rel (%p1598_p3) target bundleno = 370 (0x172), region = 40  ;;  %s1676_s30 = sand.u32 (!%p1598_p3), 1, %s1524_s19  }
  0x2d   : > { %s927_s11 = sshll.u32 (!%p1598_p3), %s1676_s30, 4  ;;  %s245_s13 = scalar_lea.sflag (!%p1598_p3), [#allocation3], %s1676_s30 }
  0x2e   : > { %s1682_s17 = scalar_lea.vmem (!%p1598_p3), [#allocation2], %s927_s11 }
  0x31   : > { %1503 = dma.done.wait (%p1641_p12), %s245_s13, 256  }
  0x32   : > { %1505 = vsyncadd (%p1641_p12), %s245_s13, 4294967040 }
  0x33   : > { %1507 = dma.done.wait (%p44_p1), [#allocation6], 4128  }
  0x34   : > { %1509 = vsyncadd (%p44_p1), [#allocation6], 4294963168 }
  0x35   : > { %1511 = dma.done.wait (%p44_p1), [#allocation9], 4096  }
  0x36   : > { %1513 = vsyncadd (%p44_p1), [#allocation9], 4294963200  ;;  %v990_v0 = vld [vmem:[#allocation5 + $0x70] sm:$0xf]  ;;  %v1209_v1 = vld [vmem:[#allocation5 + $0x74] sm:$0xf0] }
  0x37   : > { %v1054_v2 = vld [vmem:[#allocation5 + $0xf0] sm:$0xf]  ;;  %v991_v3 = vor.u32 %v1209_v1, %v990_v0  ;;  %v1225_v4 = vld [vmem:[#allocation5 + $0xf4] sm:$0xf0]  ;;  %v1208_v5 = vld [vmem:[#allocation5 + $0x74] sm:$0xf] }
  0x38   : > { %v992_v6 = vld [vmem:[#allocation5 + $0x78] sm:$0xf0]  ;;  %v1055_v7 = vor.u32 %v1225_v4, %v1054_v2  ;;  %v1224_v9 = vld [vmem:[#allocation5 + $0xf4] sm:$0xf]  ;;  %v982_v11 = vld [vmem:[#allocation5 + $0x60] sm:$0xf] }
  0x39   : > { %v995_v8 = vor.u32 %v1208_v5, %v992_v6  ;;  %v1056_v10 = vld [vmem:[#allocation5 + $0xf8] sm:$0xf0]  ;;  %493 = vmatpush.bf16.msra.mxu0 %v991_v3  ;;  %v1207_v13 = vld [vmem:[#allocation5 + $0x64] sm:$0xf0]  ;;  %v1046_v14 = vld [vmem:[#allocation5 + $0xe0] sm:$0xf] }
  0x3a   : > { %v1059_v12 = vor.u32 %v1224_v9, %v1056_v10  ;;  %v1223_v15 = vld [vmem:[#allocation5 + $0xe4] sm:$0xf0]  ;;  %506 = vmatpush.bf16.msra.mxu1 %v1055_v7  ;;  %v983_v16 = vor.u32 %v1207_v13, %v982_v11  ;;  %v1206_v18 = vld [vmem:[#allocation5 + $0x64] sm:$0xf]  ;;  %v984_v19 = vld [vmem:[#allocation5 + $0x68] sm:$0xf0] }
  0x3b   : > { %519 = vmatpush.bf16.msra.mxu2 %v995_v8  ;;  %v1047_v17 = vor.u32 %v1223_v15, %v1046_v14  ;;  %v1222_v20 = vld [vmem:[#allocation5 + $0xe4] sm:$0xf]  ;;  %v987_v21 = vor.u32 %v1206_v18, %v984_v19  ;;  %v1048_v22 = vld [vmem:[#allocation5 + $0xe8] sm:$0xf0]  ;;  %v974_v23 = vld [vmem:[#allocation5 + $0x50] sm:$0xf] }
  0x3c   : > { %532 = vmatpush.bf16.msra.mxu3 %v1059_v12  ;;  %v1205_v24 = vld [vmem:[#allocation5 + $0x54] sm:$0xf0]  ;;  %v1051_v25 = vor.u32 %v1222_v20, %v1048_v22  ;;  %v1038_v26 = vld [vmem:[#allocation5 + $0xd0] sm:$0xf]  ;;  %v1204_v28 = vld [vmem:[#allocation5 + $0x54] sm:$0xf] }
  0x3d   : > { %v1221_v27 = vld [vmem:[#allocation5 + $0xd4] sm:$0xf0]  ;;  %494 = vmatpush.bf16.msra.mxu0 %v983_v16  ;;  %v975_v29 = vor.u32 %v1205_v24, %v974_v23  ;;  %v976_v30 = vld [vmem:[#allocation5 + $0x58] sm:$0xf0]  ;;  %v1220_v31 = vld [vmem:[#allocation5 + $0xd4] sm:$0xf] }
  0x3e   : > { %v1040_v32 = vld [vmem:[#allocation5 + $0xd8] sm:$0xf0]  ;;  %507 = vmatpush.bf16.msra.mxu1 %v1047_v17  ;;  %v1039_v33 = vor.u32 %v1221_v27, %v1038_v26  ;;  %v979_v34 = vor.u32 %v1204_v28, %v976_v30  ;;  %v966_v35 = vld [vmem:[#allocation5 + $0x40] sm:$0xf]  ;;  %v1203_v36 = vld [vmem:[#allocation5 + $0x44] sm:$0xf0] }
  0x3f   : > { %520 = vmatpush.bf16.msra.mxu2 %v987_v21  ;;  %v1030_v37 = vld [vmem:[#allocation5 + $0xc0] sm:$0xf]  ;;  %v1043_v38 = vor.u32 %v1220_v31, %v1040_v32  ;;  %v1219_v39 = vld [vmem:[#allocation5 + $0xc4] sm:$0xf0]  ;;  %v1202_v40 = vld [vmem:[#allocation5 + $0x44] sm:$0xf]  ;;  %v967_v44 = vor.u32 %v1203_v36, %v966_v35 }
  0x40   : > { %533 = vmatpush.bf16.msra.mxu3 %v1051_v25  ;;  %v968_v41 = vld [vmem:[#allocation5 + $0x48] sm:$0xf0]  ;;  %v1218_v42 = vld [vmem:[#allocation5 + $0xc4] sm:$0xf]  ;;  %v1031_v45 = vor.u32 %v1219_v39, %v1030_v37  ;;  %v958_v47 = vld [vmem:[#allocation5 + $0x30] sm:$0xf] }
  0x41   : > { %v1032_v43 = vld [vmem:[#allocation5 + $0xc8] sm:$0xf0]  ;;  %495 = vmatpush.bf16.msra.mxu0 %v975_v29  ;;  %v971_v46 = vor.u32 %v1202_v40, %v968_v41  ;;  %v1201_v48 = vld [vmem:[#allocation5 + $0x34] sm:$0xf0]  ;;  %v1022_v49 = vld [vmem:[#allocation5 + $0xb0] sm:$0xf] }
  0x42   : > { %508 = vmatpush.bf16.msra.mxu1 %v1039_v33  ;;  %v1035_v50 = vor.u32 %v1218_v42, %v1032_v43  ;;  %v1217_v51 = vld [vmem:[#allocation5 + $0xb4] sm:$0xf0]  ;;  %v1200_v52 = vld [vmem:[#allocation5 + $0x34] sm:$0xf]  ;;  %v960_v53 = vld [vmem:[#allocation5 + $0x38] sm:$0xf0]  ;;  %v959_v56 = vor.u32 %v1201_v48, %v958_v47 }
  0x43   : > { %521 = vmatpush.bf16.msra.mxu2 %v979_v34  ;;  %v1216_v54 = vld [vmem:[#allocation5 + $0xb4] sm:$0xf]  ;;  %v1024_v55 = vld [vmem:[#allocation5 + $0xb8] sm:$0xf0]  ;;  %v1023_v57 = vor.u32 %v1217_v51, %v1022_v49  ;;  %v963_v58 = vor.u32 %v1200_v52, %v960_v53  ;;  %v950_v59 = vld [vmem:[#allocation5 + $0x20] sm:$0xf] }
  0x44   : > { %534 = vmatpush.bf16.msra.mxu3 %v1043_v38  ;;  %v1199_v60 = vld [vmem:[#allocation5 + $0x24] sm:$0xf0]  ;;  %v1014_v61 = vld [vmem:[#allocation5 + $0xa0] sm:$0xf]  ;;  %v1027_v62 = vor.u32 %v1216_v54, %v1024_v55  ;;  %v1198_v0 = vld [vmem:[#allocation5 + $0x24] sm:$0xf] }
  0x45   : > { %496 = vmatpush.bf16.msra.mxu0 %v967_v44  ;;  %v1215_v63 = vld [vmem:[#allocation5 + $0xa4] sm:$0xf0]  ;;  %v952_v1 = vld [vmem:[#allocation5 + $0x28] sm:$0xf0]  ;;  %v1214_v2 = vld [vmem:[#allocation5 + $0xa4] sm:$0xf]  ;;  %v951_v4 = vor.u32 %v1199_v60, %v950_v59 }
  0x46   : > { %509 = vmatpush.bf16.msra.mxu1 %v1031_v45  ;;  %v1016_v3 = vld [vmem:[#allocation5 + $0xa8] sm:$0xf0]  ;;  %v1015_v5 = vor.u32 %v1215_v63, %v1014_v61  ;;  %v955_v6 = vor.u32 %v1198_v0, %v952_v1  ;;  %v942_v7 = vld [vmem:[#allocation5 + $0x10] sm:$0xf]  ;;  %v1197_v8 = vld [vmem:[#allocation5 + $0x14] sm:$0xf0] }
  0x47   : > { %522 = vmatpush.bf16.msra.mxu2 %v971_v46  ;;  %v1006_v9 = vld [vmem:[#allocation5 + $0x90] sm:$0xf]  ;;  %v1019_v10 = vor.u32 %v1214_v2, %v1016_v3  ;;  %v1213_v11 = vld [vmem:[#allocation5 + $0x94] sm:$0xf0]  ;;  %v1196_v12 = vld [vmem:[#allocation5 + $0x14] sm:$0xf]  ;;  %v943_v16 = vor.u32 %v1197_v8, %v942_v7 }
  0x48   : > { %535 = vmatpush.bf16.msra.mxu3 %v1035_v50  ;;  %v944_v13 = vld [vmem:[#allocation5 + $0x18] sm:$0xf0]  ;;  %v1212_v14 = vld [vmem:[#allocation5 + $0x94] sm:$0xf]  ;;  %v934_v17 = vld [vmem:[#allocation5] sm:$0xf]  ;;  %v1007_v18 = vor.u32 %v1213_v11, %v1006_v9 }
  0x49   : > { %497 = vmatpush.bf16.msra.mxu0 %v959_v56  ;;  %v1008_v15 = vld [vmem:[#allocation5 + $0x98] sm:$0xf0]  ;;  %v947_v19 = vor.u32 %v1196_v12, %v944_v13  ;;  %v1195_v20 = vld [vmem:[#allocation5 + $0x4] sm:$0xf0]  ;;  %v998_v21 = vld [vmem:[#allocation5 + $0x80] sm:$0xf] }
  0x4a   : > { %510 = vmatpush.bf16.msra.mxu1 %v1023_v57  ;;  %v1211_v22 = vld [vmem:[#allocation5 + $0x84] sm:$0xf0]  ;;  %v1011_v23 = vor.u32 %v1212_v14, %v1008_v15  ;;  %v1194_v24 = vld [vmem:[#allocation5 + $0x4] sm:$0xf]  ;;  %v936_v25 = vld [vmem:[#allocation5 + $0x8] sm:$0xf0]  ;;  %v935_v30 = vor.u32 %v1195_v20, %v934_v17 }
  0x4b   : > { %523 = vmatpush.bf16.msra.mxu2 %v963_v58  ;;  %v1210_v26 = vld [vmem:[#allocation5 + $0x84] sm:$0xf]  ;;  %v1000_v27 = vld [vmem:[#allocation5 + $0x88] sm:$0xf0]  ;;  %v1118_v28 = vld [vmem:[#allocation8 + $0x70] sm:$0xf]  ;;  %v999_v34 = vor.u32 %v1211_v22, %v998_v21  ;;  %v939_v35 = vor.u32 %v1194_v24, %v936_v25 }
  0x4c   : > { %536 = vmatpush.bf16.msra.mxu3 %v1027_v62  ;;  %v1241_v29 = vld [vmem:[#allocation8 + $0x74] sm:$0xf0]  ;;  %v291_v31 = vld [vmem:[%s1682_s17] sm:$0xff]  ;;  %v1003_v37 = vor.u32 %v1210_v26, %v1000_v27  ;;  %v1239_v44 = vld [vmem:[#allocation8 + $0x64] sm:$0xf0]  ;;  %s1258_s12 = sshll.u32 %s1593_s25, 4 }
  0x4d   : > { %498 = vmatpush.bf16.msra.mxu0 %v951_v4  ;;  %v1240_v32 = vld [vmem:[#allocation8 + $0x74] sm:$0xf]  ;;  %v1120_v33 = vld [vmem:[#allocation8 + $0x78] sm:$0xf0]  ;;  %v1119_v38 = vor.u32 %v1241_v29, %v1118_v28  ;;  %v1110_v39 = vld [vmem:[#allocation8 + $0x60] sm:$0xf]  ;;  %v293_v42 = vpack.c.bf16 %v291_v31, %v291_v31  ;;  %s813_s16 = scalar_lea.hbm %s1741_s5, %s1258_s12 }
  0x4e   : > { %511 = vmatpush.bf16.msra.mxu1 %v1015_v5  ;;  %v292_v36 = vld [vmem:[%s1682_s17 + $0x8] sm:$0xff]  ;;  %v1182_v40 = vld [vmem:[#allocation8 + $0xf0] sm:$0xf]  ;;  %v1123_v43 = vor.u32 %v1240_v32, %v1120_v33  ;;  %v1111_v51 = vor.u32 %v1239_v44, %v1110_v39  ;;  %v1174_v54 = vld [vmem:[#allocation8 + $0xe0] sm:$0xf]  ;;  %s290_s23 = scalar_lea.vmem [#allocation10], %s927_s11 }
  0x4f   : > { %524 = vmatpush.bf16.msra.mxu2 %v955_v6  ;;  %v1257_v41 = vld [vmem:[#allocation8 + $0xf4] sm:$0xf0]  ;;  %v1256_v45 = vld [vmem:[#allocation8 + $0xf4] sm:$0xf]  ;;  %v1184_v46 = vld [vmem:[#allocation8 + $0xf8] sm:$0xf0]  ;;  %v294_v47 = vpack.c.bf16 %v292_v36, %v292_v36 }
  0x50   : > { %537 = vmatpush.bf16.msra.mxu3 %v1019_v10  ;;  %v1238_v48 = vld [vmem:[#allocation8 + $0x64] sm:$0xf]  ;;  %v1112_v49 = vld [vmem:[#allocation8 + $0x68] sm:$0xf0]  ;;  %v1183_v50 = vor.u32 %v1257_v41, %v1182_v40  ;;  %v1187_v52 = vor.u32 %v1256_v45, %v1184_v46  ;;  %v1102_v53 = vld [vmem:[#allocation8 + $0x50] sm:$0xf] }
  0x51   : > { %499 = vmatpush.bf16.msra.mxu0 %v943_v16  ;;  %v1255_v55 = vld [vmem:[#allocation8 + $0xe4] sm:$0xf0]  ;;  %v1115_v56 = vor.u32 %v1238_v48, %v1112_v49  ;;  %v1237_v57 = vld [vmem:[#allocation8 + $0x54] sm:$0xf0]  ;;  %v1254_v58 = vld [vmem:[#allocation8 + $0xe4] sm:$0xf] }
  0x52   : > { %512 = vmatpush.bf16.msra.mxu1 %v1007_v18  ;;  %v1176_v59 = vld [vmem:[#allocation8 + $0xe8] sm:$0xf0]  ;;  %v1236_v60 = vld [vmem:[#allocation8 + $0x54] sm:$0xf]  ;;  %v1104_v61 = vld [vmem:[#allocation8 + $0x58] sm:$0xf0]  ;;  %v1175_v62 = vor.u32 %v1255_v55, %v1174_v54  ;;  %v1103_v63 = vor.u32 %v1237_v57, %v1102_v53 }
  0x53   : > { %525 = vmatpush.bf16.msra.mxu2 %v947_v19  ;;  %v1179_v0 = vor.u32 %v1254_v58, %v1176_v59  ;;  %v1094_v1 = vld [vmem:[#allocation8 + $0x40] sm:$0xf]  ;;  %v1166_v2 = vld [vmem:[#allocation8 + $0xd0] sm:$0xf]  ;;  %v1253_v3 = vld [vmem:[#allocation8 + $0xd4] sm:$0xf0]  ;;  %v1107_v4 = vor.u32 %v1236_v60, %v1104_v61 }
  0x54   : > { %538 = vmatpush.bf16.msra.mxu3 %v1011_v23  ;;  %v1235_v5 = vld [vmem:[#allocation8 + $0x44] sm:$0xf0]  ;;  %v1252_v6 = vld [vmem:[#allocation8 + $0xd4] sm:$0xf]  ;;  %v1168_v7 = vld [vmem:[#allocation8 + $0xd8] sm:$0xf0]  ;;  %v1167_v10 = vor.u32 %v1253_v3, %v1166_v2 }
  0x55   : > { %500 = vmatpush.bf16.msra.mxu0 %v935_v30  ;;  %v1234_v8 = vld [vmem:[#allocation8 + $0x44] sm:$0xf]  ;;  %v1096_v9 = vld [vmem:[#allocation8 + $0x48] sm:$0xf0]  ;;  %v1095_v11 = vor.u32 %v1235_v5, %v1094_v1  ;;  %v1171_v12 = vor.u32 %v1252_v6, %v1168_v7  ;;  %v1086_v13 = vld [vmem:[#allocation8 + $0x30] sm:$0xf] }
  0x56   : > { %513 = vmatpush.bf16.msra.mxu1 %v999_v34  ;;  %v1158_v14 = vld [vmem:[#allocation8 + $0xc0] sm:$0xf]  ;;  %v1251_v15 = vld [vmem:[#allocation8 + $0xc4] sm:$0xf0]  ;;  %v1099_v16 = vor.u32 %v1234_v8, %v1096_v9  ;;  %v1233_v17 = vld [vmem:[#allocation8 + $0x34] sm:$0xf0] }
  0x57   : > { %526 = vmatpush.bf16.msra.mxu2 %v939_v35  ;;  %v1250_v18 = vld [vmem:[#allocation8 + $0xc4] sm:$0xf]  ;;  %v1160_v19 = vld [vmem:[#allocation8 + $0xc8] sm:$0xf0]  ;;  %v1232_v20 = vld [vmem:[#allocation8 + $0x34] sm:$0xf]  ;;  %v1159_v22 = vor.u32 %v1251_v15, %v1158_v14  ;;  %v1087_v23 = vor.u32 %v1233_v17, %v1086_v13 }
  0x58   : > { %539 = vmatpush.bf16.msra.mxu3 %v1003_v37  ;;  %501 = vmatmul.bf16.vlgmr.msra.gmra.mxu0 %v293_v42  ;;  %v1088_v21 = vld [vmem:[#allocation8 + $0x38] sm:$0xf0]  ;;  %v1163_v24 = vor.u32 %v1250_v18, %v1160_v19  ;;  %v1078_v26 = vld [vmem:[#allocation8 + $0x20] sm:$0xf]  ;;  %v1231_v27 = vld [vmem:[#allocation8 + $0x24] sm:$0xf0] }
  0x59   : > { %747 = vmatpush.bf16.msrb.mxu0 %v1119_v38  ;;  %514 = vmatmul.bf16.vlgmr.msra.gmra.mxu1 %v294_v47  ;;  %v1091_v25 = vor.u32 %v1232_v20, %v1088_v21  ;;  %v1230_v28 = vld [vmem:[#allocation8 + $0x24] sm:$0xf]  ;;  %v1080_v29 = vld [vmem:[#allocation8 + $0x28] sm:$0xf0]  ;;  %v1079_v30 = vor.u32 %v1231_v27, %v1078_v26  ;;  %v1150_v32 = vld [vmem:[#allocation8 + $0xb0] sm:$0xf] }
  0x5a   : > { %527 = vmatmul.bf16.vlgmr.msra.gmra.mxu2 %v293_v42  ;;  %760 = vmatpush.bf16.msrb.mxu1 %v1183_v50  ;;  %v1083_v31 = vor.u32 %v1230_v28, %v1080_v29  ;;  %v1249_v33 = vld [vmem:[#allocation8 + $0xb4] sm:$0xf0]  ;;  %v1248_v34 = vld [vmem:[#allocation8 + $0xb4] sm:$0xf]  ;;  %v1152_v36 = vld [vmem:[#allocation8 + $0xb8] sm:$0xf0] }
  0x5b   : > { %773 = vmatpush.bf16.msrb.mxu2 %v1123_v43  ;;  %540 = vmatmul.bf16.vlgmr.msra.gmra.mxu3 %v294_v47  ;;  %v1151_v35 = vor.u32 %v1249_v33, %v1150_v32  ;;  %v1155_v37 = vor.u32 %v1248_v34, %v1152_v36  ;;  %v1070_v38 = vld [vmem:[#allocation8 + $0x10] sm:$0xf]  ;;  %v1229_v39 = vld [vmem:[#allocation8 + $0x14] sm:$0xf0]  ;;  %v1228_v40 = vld [vmem:[#allocation8 + $0x14] sm:$0xf] }
  0x5c   : > { %786 = vmatpush.bf16.msrb.mxu3 %v1187_v52  ;;  %v1071_v41 = vor.u32 %v1229_v39, %v1070_v38  ;;  %v1072_v42 = vld [vmem:[#allocation8 + $0x18] sm:$0xf0]  ;;  %v1142_v44 = vld [vmem:[#allocation8 + $0xa0] sm:$0xf]  ;;  %v1247_v45 = vld [vmem:[#allocation8 + $0xa4] sm:$0xf0] }
  0x5d   : > { %748 = vmatpush.bf16.msrb.mxu0 %v1111_v51  ;;  %v1075_v43 = vor.u32 %v1228_v40, %v1072_v42  ;;  %v1246_v46 = vld [vmem:[#allocation8 + $0xa4] sm:$0xf]  ;;  %v1143_v47 = vor.u32 %v1247_v45, %v1142_v44  ;;  %v1144_v48 = vld [vmem:[#allocation8 + $0xa8] sm:$0xf0]  ;;  %v1062_v50 = vld [vmem:[#allocation8] sm:$0xf] }
  0x5e   : > { %761 = vmatpush.bf16.msrb.mxu1 %v1175_v62  ;;  %v1147_v49 = vor.u32 %v1246_v46, %v1144_v48  ;;  %v1227_v51 = vld [vmem:[#allocation8 + $0x4] sm:$0xf0]  ;;  %v1226_v52 = vld [vmem:[#allocation8 + $0x4] sm:$0xf]  ;;  %v1064_v54 = vld [vmem:[#allocation8 + $0x8] sm:$0xf0] }
  0x5f   : > { %774 = vmatpush.bf16.msrb.mxu2 %v1115_v56  ;;  %v1063_v53 = vor.u32 %v1227_v51, %v1062_v50  ;;  %v1067_v55 = vor.u32 %v1226_v52, %v1064_v54  ;;  %v1134_v56 = vld [vmem:[#allocation8 + $0x90] sm:$0xf]  ;;  %v1245_v57 = vld [vmem:[#allocation8 + $0x94] sm:$0xf0]  ;;  %v1244_v59 = vld [vmem:[#allocation8 + $0x94] sm:$0xf] }
  0x60   : > { %787 = vmatpush.bf16.msrb.mxu3 %v1179_v0  ;;  %v1135_v58 = vor.u32 %v1245_v57, %v1134_v56  ;;  %v1136_v60 = vld [vmem:[#allocation8 + $0x98] sm:$0xf0]  ;;  %v1126_v62 = vld [vmem:[#allocation8 + $0x80] sm:$0xf]  ;;  %v1242_v0 = vld [vmem:[#allocation8 + $0x84] sm:$0xf] }
  0x61   : > { %749 = vmatpush.bf16.msrb.mxu0 %v1103_v63  ;;  %v1139_v61 = vor.u32 %v1244_v59, %v1136_v60  ;;  %v1243_v63 = vld [vmem:[#allocation8 + $0x84] sm:$0xf0]  ;;  %v1128_v2 = vld [vmem:[#allocation8 + $0x88] sm:$0xf0]  ;;  %s815_s24 = sshll.u32 %s290_s23, 4  ;;  %s817_s8 = sshll.u32 %s813_s16, 4  ;;  %s816_s24 = int_to_ptr.vmem [resolvable:$true] %s815_s24  ;;  %s818_s8 = int_to_ptr.hbm [resolvable:$true] %s817_s8 }
  0x62   : > { %762 = vmatpush.bf16.msrb.mxu1 %v1167_v10  ;;  %v1127_v1 = vor.u32 %v1243_v63, %v1126_v62  ;;  %v1131_v3 = vor.u32 %v1242_v0, %v1128_v2  ;;  %s802_s25 = scalar_lea.sflag [#allocation4], %s1676_s30  ;;  %s1472_s7 = sshra.s32 %s818_s8, 4  ;;  %s1473_s7 = int_to_ptr.hbm [resolvable:$true] %s1472_s7 }
  0x63   : > { %775 = vmatpush.bf16.msrb.mxu2 %v1107_v4  ;;  %v327_v4 = vld [vmem:[#allocation7] sm:$0x3]  ;;  %s1474_s9 = scalar_lea.hbm %s1473_s7, 16  ;;  %s1478_s13 = scalar_lea.hbm %s1741_s5, 32 }
  0x64   : > { %788 = vmatpush.bf16.msrb.mxu3 %v1171_v12  ;;  %v329_v5 = vperm.slane %v327_v4, 0  ;;  %v330_v10 = vperm.slane %v327_v4, 1  ;;  %p1475_p1 = scmp.ne.s32.totalorder %s1473_s7, %s1474_s9  ;;  %p1479_p12 = scmp.lt.s32.totalorder %s1473_s7, %s1741_s5 }
  0x65   : > { %750 = vmatpush.bf16.msrb.mxu0 %v1095_v11  ;;  %p1480_p8 = scmp.lt.s32.totalorder %s1478_s13, %s1474_s9 }
  0x66   : > { %763 = vmatpush.bf16.msrb.mxu1 %v1159_v22  ;;  %p1476_p3 = pnand %p1475_p1, %p1645_p13 }
  0x67   : > { %776 = vmatpush.bf16.msrb.mxu2 %v1099_v16  ;;  %p1481_p7 = por %p1480_p8, %p1479_p12 }
  0x68   : > { %789 = vmatpush.bf16.msrb.mxu3 %v1163_v24  ;;  %p1477_p5 = pneg %p1476_p3 }
  0x69   : > { %751 = vmatpush.bf16.msrb.mxu0 %v1087_v23  ;;  %v581_v23 = vld [vmem:[%s1740_s4] sm:$0x3] }
  0x6a   : > { %764 = vmatpush.bf16.msrb.mxu1 %v1151_v35  ;;  %v583_v24 = vperm.slane %v581_v23, 0  ;;  %v584_v27 = vperm.slane %v581_v23, 1  ;;  %p1482_p9 = pnand %p1481_p7, %p1477_p5 }
  0x6b   : > { %777 = vmatpush.bf16.msrb.mxu2 %v1091_v25 }
  0x6c   : > { %790 = vmatpush.bf16.msrb.mxu3 %v1155_v37 }
  0x6d   : > { %752 = vmatpush.bf16.msrb.mxu0 %v1079_v30 }
  0x6e   : > { %765 = vmatpush.bf16.msrb.mxu1 %v1143_v47 }
  0x6f   : > { %778 = vmatpush.bf16.msrb.mxu2 %v1083_v31 }
  0x70   : > { %791 = vmatpush.bf16.msrb.mxu3 %v1147_v49 }
  0x71   : > { %753 = vmatpush.bf16.msrb.mxu0 %v1071_v41 }
  0x72   : > { %766 = vmatpush.bf16.msrb.mxu1 %v1135_v58 }
  0x73   : > { %779 = vmatpush.bf16.msrb.mxu2 %v1075_v43 }
  0x74   : > { %792 = vmatpush.bf16.msrb.mxu3 %v1139_v61 }
  0x75   : > { %754 = vmatpush.bf16.msrb.mxu0 %v1063_v53 }
  0x76   : > { %767 = vmatpush.bf16.msrb.mxu1 %v1127_v1 }
  0x77   : > { %780 = vmatpush.bf16.msrb.mxu2 %v1067_v55 }
  0x78   : > { %793 = vmatpush.bf16.msrb.mxu3 %v1131_v3 }
  0xd5   : > { %v502_v6 = vpop.f32.mrf.mxu0 }
  0xd6   : > { %v503_v7 = vadd.f32 %v502_v6, %v329_v5  ;;  %v515_v8 = vpop.f32.mrf.mxu1 }
  0xd8   : > { %v516_v9 = vadd.f32 %v515_v8, %v503_v7 }
  0xda   : > { %v545_v11 = vmax.f32 %v516_v9, 0.0 }
  0xdc   : > { %v547_v12 = vpack.c.bf16 %v545_v11, %v545_v11 }
  0xdd   : > { %v528_v13 = vpop.f32.mrf.mxu2  ;;  %v504_v16 = vpop.f32.mrf.mxu0 }
  0xde   : > { %v529_v14 = vadd.f32 %v528_v13, %v330_v10  ;;  %v541_v15 = vpop.f32.mrf.mxu3  ;;  %v517_v17 = vpop.f32.mrf.mxu1  ;;  %755 = vmatmul.bf16.vlgmr.msrb.gmra.mxu0 %v547_v12  ;;  %781 = vmatmul.bf16.vlgmr.msrb.gmra.mxu2 %v547_v12 }
  0xe0   : > { %v542_v18 = vadd.f32 %v541_v15, %v529_v14 }
  0xe2   : > { %v546_v19 = vmax.f32 %v542_v18, 0.0 }
  0xe4   : > { %v548_v20 = vpack.c.bf16 %v546_v19, %v546_v19 }
  0xe5   : > { %v530_v21 = vpop.f32.mrf.mxu2 }
  0xe6   : > { %v543_v22 = vpop.f32.mrf.mxu3  ;;  %768 = vmatmul.bf16.vlgmr.msrb.gmra.mxu1 %v548_v20  ;;  %794 = vmatmul.bf16.vlgmr.msrb.gmra.mxu3 %v548_v20 }
 0x15b   : > { %v756_v25 = vpop.f32.mrf.mxu0 }
 0x15c   : > { %v757_v26 = vadd.f32 %v756_v25, %v583_v24 }
 0x161   : > { %v782_v28 = vpop.f32.mrf.mxu2 }
 0x162   : > { %v783_v32 = vadd.f32 %v782_v28, %v584_v27 }
 0x163   : > { %v769_v29 = vpop.f32.mrf.mxu1  ;;  %v758_v31 = vpop.f32.mrf.mxu0 }
 0x164   : > { %v770_v30 = vadd.f32 %v769_v29, %v757_v26 }
 0x166   : > { %799 = vst [vmem:[%s290_s23] sm:$0xff] %v770_v30 }
 0x169   : > { %v795_v33 = vpop.f32.mrf.mxu3  ;;  %v784_v35 = vpop.f32.mrf.mxu2 }
 0x16a   : > { %v796_v34 = vadd.f32 %v795_v33, %v783_v32 }
 0x16b   : > { %v771_v36 = vpop.f32.mrf.mxu1 }
 0x16c   : > { %800 = vst [vmem:[%s290_s23 + $0x8] sm:$0xff] %v796_v34 }
 0x16d   : > { %1485 = shalt.err (!%p1482_p9)
}
 0x16e   : > { %1273 = dma.vmem_to_hbm [thread:$0]  (%p1645_p13), %s816_s24, 256, %s818_s8, %s802_s25  }
 0x171   : > { %v797_v37 = vpop.f32.mrf.mxu3 }
 0x172 PF: > { %s829_s30 = sand.u32 1, %s1520_s18   ;;  %p1748_p10 = scmp.ge.s32.totalorder %s1532_s21, 2 }
 0x173   : > { %s830_s28 = scalar_lea.sflag [#allocation4], %s829_s30 }
 0x174   : > { %p1290_p11 = pnand %p1748_p10, %p1650_p4 }
 0x176   : > { %p1291_p0 = pneg %p1290_p11 }
 0x178   : > { %1515 = dma.done.wait (%p1291_p0), %s830_s28, 256  }
 0x179   : > { %1517 = vsyncadd (%p1291_p0), %s830_s28, 4294967040  ;;  %p20_p2 = scmp.ge.s32.totalorder %s1625_s22, 4   ;;  %s1749_s18 = smov %s1524_s19 }
 0x17a   : > { %s1750_s19 = smov %s1528_s20  ;;  %s1751_s20 = smov %s1637_s27 }
 0x17b   : > { %s1752_s21 = smov %s1625_s22  ;;  %22 = sbr.rel (!%p20_p2) target bundleno = 7 (0x7), region = 97 }
 0x180   :  { %836 = vsyncpa [#allocation3], 1 }
 0x181   :  { %838 = vsyncpa [#allocation3 + $0x1], 1 }
 0x182   :  { %839 = vsyncpa [#allocation6], 1 }
 0x183   :  { %840 = vsyncpa [#allocation9], 1 }
 0x184   :  { %841 = vsyncpa [#allocation4], 1 }
 0x185   :  { %843 = vsyncpa [#allocation4 + $0x1], 1 }

</bundles_post_ra>
